<compile_context>
chip_gen: v7x
topology: tpu7x:2x2x1
jax: 0.10.0
libtpu: 0.0.40
codegen_flags: <defaults>
</compile_context>

<pallas_src>
import jax
import jax.numpy as jnp
from jax import lax
from jax.experimental import pallas as pl
from jax.experimental.pallas import tpu as pltpu


def _round_up(v, m):
    return (v + m - 1) // m * m


# ----------------------------------------------------------------------------
# Fused ASPP kernel (kernel body is generated per static config)
# ----------------------------------------------------------------------------
def _make_aspp_kernel(H, W, Cin, C, dilations, pool):
    n_pool = 1 if pool else 0
    n_branch = n_pool + len(dilations)
    Ccat = n_branch * C
    HW = H * W
    max_d = max(dilations)
    use_xpad = any(d > 1 for d in dilations)

    # Lane margins of the zero-padded buffers.  Multiples of 128 so the
    # interior slab [R : R+HW] is lane-aligned; only shifted taps read at
    # unaligned lane offsets.
    RX = _round_up(max_d * (W + 1), 128) if use_xpad else 0
    RC = _round_up(W + 1, 128)

    bf16, f32 = jnp.bfloat16, jnp.float32

    def kernel(x_ref, wall_ref, wb_ref, bcat_ref, bout_ref, o_ref,
               xp_ref, catp_ref):
        # Column-within-row index along the lane dim.  Only horizontal
        # row-wrap taps need masking; out-of-image rows fall into the zeroed
        # margins of the padded buffers.
        col_iota = lax.broadcasted_iota(jnp.int32, (1, HW), 1)
        w_idx = (jnp.bitwise_and(col_iota, W - 1) if W & (W - 1) == 0
                 else col_iota % W)

        def shifted(src_ref, base, t, s):
            """(rows, H*W) window of src_ref for a spatial tap offset (t, s)."""
            start = base + t * W + s
            patch = src_ref[:, start:start + HW]
            if s == 0:
                return patch
            valid = (w_idx < W - s) if s > 0 else (w_idx >= -s)
            return jnp.where(valid, patch, 0.0)

        def mxu(w_bf16, act_f32):
            # MXU matmul: bf16 operands, f32 accumulation.
            return jnp.dot(w_bf16, act_f32.astype(bf16),
                           preferred_element_type=f32)

        x = x_ref[0]                                        # (Cin, H*W) f32

        # Zero the padded scratch buffers, then drop the activations in.
        catp_ref[...] = jnp.zeros_like(catp_ref)
        if use_xpad:
            xp_ref[...] = jnp.zeros_like(xp_ref)
            xp_ref[:, RX:RX + HW] = x

        # ---- stack every branch's GEMM operand along the contraction dim ---
        blocks = []
        if pool:
            # AdaptiveAvgPool2d(1); bilinear upsample of a 1x1 map == broadcast.
            pooled = jnp.mean(x, axis=1, keepdims=True)          # (Cin, 1)
            blocks.append(jnp.broadcast_to(pooled, (Cin, HW)))
        for d in dilations:
            if d == 1:                                           # 1x1 branch
                blocks.append(x)
            else:                                                # 3x3, pad=d
                for ky in range(3):
                    for kx in range(3):
                        blocks.append(
                            shifted(xp_ref, RX, (ky - 1) * d, (kx - 1) * d))
        stacked = jnp.concatenate(blocks, axis=0)                # (K_all, H*W)

        # One MXU GEMM computes every ASPP branch (block-diagonal weight),
        # fused with the folded-BN bias + ReLU epilogue.
        cat = jnp.maximum(mxu(wall_ref[...], stacked) + bcat_ref[...], 0.0)
        catp_ref[:, RC:RC + HW] = cat                            # (Ccat, H*W)

        # ---- bottleneck: 3x3, pad=1 ConvBNReLU over the channel concat -----
        pcat = jnp.concatenate(
            [shifted(catp_ref, RC, ky - 1, kx - 1)
             for ky in range(3) for kx in range(3)], axis=0)     # (9*Ccat, H*W)
        o_ref[0] = jnp.maximum(mxu(wb_ref[...], pcat) + bout_ref[...], 0.0)

    scratch = [
        pltpu.VMEM((Cin, HW + 2 * RX) if use_xpad else (8, 128), f32),
        pltpu.VMEM((Ccat, HW + 2 * RC), f32),
    ]
    return kernel, scratch


# ----------------------------------------------------------------------------
# Host-side parameter folding (BatchNorm folded into conv weights)
# ----------------------------------------------------------------------------
def _fold_conv_bn(p, eps=1e-5):
    """Fold eval-mode BatchNorm into the conv: w' = w*s, b' = beta - mean*s."""
    s = p["gamma"] / jnp.sqrt(p["var"] + eps)
    return p["w"] * s[:, None, None, None], p["beta"] - p["mean"] * s


def _gemm_weight(w_oihw):
    """OIHW conv weight -> (Cout, kh*kw*Cin) GEMM weight, tap-major columns."""
    Cout, Cin, kh, kw = w_oihw.shape
    if kh == 1 and kw == 1:
        return w_oihw.reshape(Cout, Cin)
    return jnp.transpose(w_oihw, (0, 2, 3, 1)).reshape(Cout, kh * kw * Cin)


# ----------------------------------------------------------------------------
# ASPPWrapper forward (NCHW in / NCHW out)
# ----------------------------------------------------------------------------
def aspp_wrapper_forward(x_nchw, params, *, dilations, pool=True):
    B, Cin, H, W = x_nchw.shape
    C = params["bottleneck"]["w"].shape[0]

    branch_w, branch_b = [], []
    if pool:
        w, b = _fold_conv_bn(params["image_pool"])
        branch_w.append(_gemm_weight(w)); branch_b.append(b)
    for i in range(len(dilations)):
        w, b = _fold_conv_bn(params["aspp"][i])
        branch_w.append(_gemm_weight(w)); branch_b.append(b)
    wb, bb = _fold_conv_bn(params["bottleneck"])

    # All ASPP branches fuse into one GEMM via a block-diagonal weight whose
    # column blocks are [pooled | x | 9 taps per dilated branch].
    wall = jax.scipy.linalg.block_diag(*branch_w).astype(jnp.bfloat16)
    wb_mat = _gemm_weight(wb).astype(jnp.bfloat16)                 # (C, 9*Ccat)
    bcat = jnp.concatenate(branch_b)[:, None].astype(jnp.float32)  # (Ccat, 1)
    bout = bb[:, None].astype(jnp.float32)                         # (C, 1)

    # NCHW -> (B, Cin, H*W): a pure reshape, no host-side transpose needed.
    x_rows = x_nchw.reshape(B, Cin, H * W)

    kernel, scratch = _make_aspp_kernel(H, W, Cin, C, tuple(dilations), pool)

    out = pl.pallas_call(
        kernel,
        out_shape=jax.ShapeDtypeStruct((B, C, H * W), jnp.float32),
        grid_spec=pltpu.PrefetchScalarGridSpec(
            num_scalar_prefetch=0,
            grid=(B,),
            in_specs=[pl.BlockSpec((1, Cin, H * W), lambda b: (b, 0, 0)),
                      pl.BlockSpec(wall.shape, lambda b: (0, 0)),
                      pl.BlockSpec(wb_mat.shape, lambda b: (0, 0)),
                      pl.BlockSpec(bcat.shape, lambda b: (0, 0)),
                      pl.BlockSpec(bout.shape, lambda b: (0, 0))],
            out_specs=pl.BlockSpec((1, C, H * W), lambda b: (b, 0, 0)),
            scratch_shapes=scratch),
        compiler_params=pltpu.CompilerParams(
            dimension_semantics=("parallel",),
            vmem_limit_bytes=32 * 1024 * 1024),
    )(x_rows, wall, wb_mat, bcat, bout)

    return out.reshape(B, C, H, W)                         # NCHW, free reshape


# ----------------------------------------------------------------------------
# Parameter construction and pure-JAX reference (for verification)
# ----------------------------------------------------------------------------
def make_convbnrelu_params(key, cin, cout, k):
    k1, k2, k3, k4, k5 = jax.random.split(key, 5)
    return dict(
        w=0.1 * jax.random.normal(k1, (cout, cin, k, k), jnp.float32),
        gamma=1.0 + 0.1 * jax.random.normal(k2, (cout,), jnp.float32),
        beta=0.1 * jax.random.normal(k3, (cout,), jnp.float32),
        mean=0.1 * jax.random.normal(k4, (cout,), jnp.float32),
        var=1.0 + 0.1 * jnp.square(jax.random.normal(k5, (cout,), jnp.float32)),
    )


def ref_conv_bn_relu(x_nchw, p, dilation=1, padding=0, eps=1e-5):
    y = lax.conv_general_dilated(
        x_nchw, p["w"], (1, 1), [(padding, padding), (padding, padding)],
        rhs_dilation=(dilation, dilation),
        dimension_numbers=("NCHW", "OIHW", "NCHW"))
    s = p["gamma"] / jnp.sqrt(p["var"] + eps)
    b = p["beta"] - p["mean"] * s
    return jnp.maximum(y * s[None, :, None, None] + b[None, :, None, None], 0.0)


def ref_forward(x, params, dilations):
    outs = []
    pooled = jnp.mean(x, axis=(2, 3), keepdims=True)
    y = ref_conv_bn_relu(pooled, params["image_pool"])
    outs.append(jnp.broadcast_to(y, (x.shape[0], y.shape[1],
                                     x.shape[2], x.shape[3])))
    for i, d in enumerate(dilations):
        pad = 0 if d == 1 else d
        outs.append(ref_conv_bn_relu(x, params["aspp"][i], dilation=d,
                                     padding=pad))
    cat = jnp.concatenate(outs, axis=1)
    return ref_conv_bn_relu(cat, params["bottleneck"], dilation=1, padding=1)


# ----------------------------------------------------------------------------
if __name__ == "__main__":
    key = jax.random.PRNGKey(0)
    in_channels, channels = 8, 8
    dilations = (1, 3, 6)
    B, H, W = 2, 16, 16

    keys = jax.random.split(key, 2 + len(dilations) + 1)
    params = {
        "image_pool": make_convbnrelu_params(keys[0], in_channels, channels, 1),
        "aspp": [make_convbnrelu_params(keys[1 + i], in_channels, channels,
                                        1 if d == 1 else 3)
                 for i, d in enumerate(dilations)],
        "bottleneck": make_convbnrelu_params(
            keys[1 + len(dilations)],
            (len(dilations) + 1) * channels, channels, 3),
    }
    x = jax.random.normal(keys[-1], (B, in_channels, H, W), jnp.float32)

    fwd = jax.jit(aspp_wrapper_forward, static_argnames=("dilations", "pool"))
    out = fwd(x, params, dilations=dilations, pool=True)
    out = jax.block_until_ready(out)

    assert out.shape == (B, channels, H, W)
    ref = ref_forward(x, params, dilations)
    err = float(jnp.max(jnp.abs(out - ref)))
    # bf16 MXU operands with f32 accumulation vs the f32 reference convs.
    assert bool(jnp.allclose(out, ref, atol=5e-2, rtol=5e-2)), err
    print("KERNEL_OK")
</pallas_src>

<mosaic_0001>
module attributes {stable_mosaic.version = 11 : i64} {
  func.func @kernel(%arg0: i32, %arg1: memref<1x8x256xf32, #tpu.memory_space<vmem>>, %arg2: memref<32x160xbf16, #tpu.memory_space<vmem>>, %arg3: memref<8x288xbf16, #tpu.memory_space<vmem>>, %arg4: memref<32x1xf32, #tpu.memory_space<vmem>>, %arg5: memref<8x1xf32, #tpu.memory_space<vmem>>, %arg6: memref<1x8x256xf32, #tpu.memory_space<vmem>>, %arg7: memref<8x512xf32, #tpu.memory_space<vmem>>, %arg8: memref<32x512xf32, #tpu.memory_space<vmem>>) attributes {dimension_semantics = [#tpu.dimension_semantics<parallel>], iteration_bounds = array<i64: 2>, scalar_prefetch = 0 : i64, scratch_operands = 2 : i64, tpu.core_type = #tpu.core_type<tc>, window_params = [{transform_indices = @transform_0, window_bounds = array<i64: 1, 8, 256>}, {pipeline_mode = #tpu.pipeline_mode<synchronous>, transform_indices = @transform_1, window_bounds = array<i64: 32, 160>}, {pipeline_mode = #tpu.pipeline_mode<synchronous>, transform_indices = @transform_2, window_bounds = array<i64: 8, 288>}, {pipeline_mode = #tpu.pipeline_mode<synchronous>, transform_indices = @transform_3, window_bounds = array<i64: 32, 1>}, {pipeline_mode = #tpu.pipeline_mode<synchronous>, transform_indices = @transform_4, window_bounds = array<i64: 8, 1>}, {transform_indices = @transform_5, window_bounds = array<i64: 1, 8, 256>}]} {
    %0 = tpu.iota {dimensions = array<i32: 1>} : vector<1x256xi32>
    %c15_i32 = arith.constant 15 : i32
    %1 = vector.broadcast %c15_i32 : i32 to vector<1x256xi32>
    %2 = arith.andi %0, %1 : vector<1x256xi32>
    %c0 = arith.constant 0 : index
    %c0_0 = arith.constant 0 : index
    %c0_1 = arith.constant 0 : index
    %3 = vector.load %arg1[%c0, %c0_0, %c0_1] : memref<1x8x256xf32, #tpu.memory_space<vmem>>, vector<1x8x256xf32>
    %4 = vector.shape_cast %3 : vector<1x8x256xf32> to vector<8x256xf32>
    %cst = arith.constant 0.000000e+00 : f32
    %5 = vector.broadcast %cst : f32 to vector<32x512xf32>
    %c0_2 = arith.constant 0 : index
    %c0_3 = arith.constant 0 : index
    %6 = vector.load %arg8[%c0_2, %c0_3] : memref<32x512xf32, #tpu.memory_space<vmem>>, vector<32x512xf32>
    tpu.vector_store %arg8[%c0_2, %c0_3], %5 {strides = array<i32>} : memref<32x512xf32, #tpu.memory_space<vmem>>, vector<32x512xf32>,
    %cst_4 = arith.constant 0.000000e+00 : f32
    %7 = vector.broadcast %cst_4 : f32 to vector<8x512xf32>
    %c0_5 = arith.constant 0 : index
    %c0_6 = arith.constant 0 : index
    %8 = vector.load %arg7[%c0_5, %c0_6] : memref<8x512xf32, #tpu.memory_space<vmem>>, vector<8x512xf32>
    tpu.vector_store %arg7[%c0_5, %c0_6], %7 {strides = array<i32>} : memref<8x512xf32, #tpu.memory_space<vmem>>, vector<8x512xf32>,
    %c0_7 = arith.constant 0 : index
    %c128 = arith.constant 128 : index
    %9 = vector.load %arg7[%c0_7, %c128] : memref<8x512xf32, #tpu.memory_space<vmem>>, vector<8x256xf32>
    tpu.vector_store %arg7[%c0_7, %c128], %4 {strides = array<i32>} : memref<8x512xf32, #tpu.memory_space<vmem>>, vector<8x256xf32>,
    %cst_8 = arith.constant dense<0.000000e+00> : vector<8xf32>
    %10 = vector.multi_reduction <add>, %4, %cst_8 [1] : vector<8x256xf32> to vector<8xf32>
    %11 = vector.shape_cast %10 : vector<8xf32> to vector<8x1xf32>
    %cst_9 = arith.constant 2.560000e+02 : f32
    %12 = vector.broadcast %cst_9 : f32 to vector<8x1xf32>
    %13 = arith.divf %11, %12 : vector<8x1xf32>
    %14 = vector.shape_cast %13 : vector<8x1xf32> to vector<8x1xf32>
    %15 = vector.broadcast %14 : vector<8x1xf32> to vector<8x256xf32>
    %c0_10 = arith.constant 0 : index
    %c77 = arith.constant 77 : index
    %16 = vector.load %arg7[%c0_10, %c77] : memref<8x512xf32, #tpu.memory_space<vmem>>, vector<8x256xf32>
    %c3_i32 = arith.constant 3 : i32
    %17 = vector.broadcast %c3_i32 : i32 to vector<1x256xi32>
    %18 = arith.cmpi sge, %2, %17 : vector<1x256xi32>
    %cst_11 = arith.constant 0.000000e+00 : f32
    %19 = vector.shape_cast %18 : vector<1x256xi1> to vector<1x256xi1>
    %20 = vector.broadcast %19 : vector<1x256xi1> to vector<8x256xi1>
    %21 = vector.broadcast %cst_11 : f32 to vector<8x256xf32>
    %22 = arith.select %20, %16, %21 : vector<8x256xi1>, vector<8x256xf32>
    %c0_12 = arith.constant 0 : index
    %c80 = arith.constant 80 : index
    %23 = vector.load %arg7[%c0_12, %c80] : memref<8x512xf32, #tpu.memory_space<vmem>>, vector<8x256xf32>
    %c0_13 = arith.constant 0 : index
    %c83 = arith.constant 83 : index
    %24 = vector.load %arg7[%c0_13, %c83] : memref<8x512xf32, #tpu.memory_space<vmem>>, vector<8x256xf32>
    %c13_i32 = arith.constant 13 : i32
    %25 = vector.broadcast %c13_i32 : i32 to vector<1x256xi32>
    %26 = arith.cmpi slt, %2, %25 : vector<1x256xi32>
    %cst_14 = arith.constant 0.000000e+00 : f32
    %27 = vector.shape_cast %26 : vector<1x256xi1> to vector<1x256xi1>
    %28 = vector.broadcast %27 : vector<1x256xi1> to vector<8x256xi1>
    %29 = vector.broadcast %cst_14 : f32 to vector<8x256xf32>
    %30 = arith.select %28, %24, %29 : vector<8x256xi1>, vector<8x256xf32>
    %c0_15 = arith.constant 0 : index
    %c125 = arith.constant 125 : index
    %31 = vector.load %arg7[%c0_15, %c125] : memref<8x512xf32, #tpu.memory_space<vmem>>, vector<8x256xf32>
    %c3_i32_16 = arith.constant 3 : i32
    %32 = vector.broadcast %c3_i32_16 : i32 to vector<1x256xi32>
    %33 = arith.cmpi sge, %2, %32 : vector<1x256xi32>
    %cst_17 = arith.constant 0.000000e+00 : f32
    %34 = vector.shape_cast %33 : vector<1x256xi1> to vector<1x256xi1>
    %35 = vector.broadcast %34 : vector<1x256xi1> to vector<8x256xi1>
    %36 = vector.broadcast %cst_17 : f32 to vector<8x256xf32>
    %37 = arith.select %35, %31, %36 : vector<8x256xi1>, vector<8x256xf32>
    %c0_18 = arith.constant 0 : index
    %c128_19 = arith.constant 128 : index
    %38 = vector.load %arg7[%c0_18, %c128_19] : memref<8x512xf32, #tpu.memory_space<vmem>>, vector<8x256xf32>
    %c0_20 = arith.constant 0 : index
    %c131 = arith.constant 131 : index
    %39 = vector.load %arg7[%c0_20, %c131] : memref<8x512xf32, #tpu.memory_space<vmem>>, vector<8x256xf32>
    %c13_i32_21 = arith.constant 13 : i32
    %40 = vector.broadcast %c13_i32_21 : i32 to vector<1x256xi32>
    %41 = arith.cmpi slt, %2, %40 : vector<1x256xi32>
    %cst_22 = arith.constant 0.000000e+00 : f32
    %42 = vector.shape_cast %41 : vector<1x256xi1> to vector<1x256xi1>
    %43 = vector.broadcast %42 : vector<1x256xi1> to vector<8x256xi1>
    %44 = vector.broadcast %cst_22 : f32 to vector<8x256xf32>
    %45 = arith.select %43, %39, %44 : vector<8x256xi1>, vector<8x256xf32>
    %c0_23 = arith.constant 0 : index
    %c173 = arith.constant 173 : index
    %46 = vector.load %arg7[%c0_23, %c173] : memref<8x512xf32, #tpu.memory_space<vmem>>, vector<8x256xf32>
    %c3_i32_24 = arith.constant 3 : i32
    %47 = vector.broadcast %c3_i32_24 : i32 to vector<1x256xi32>
    %48 = arith.cmpi sge, %2, %47 : vector<1x256xi32>
    %cst_25 = arith.constant 0.000000e+00 : f32
    %49 = vector.shape_cast %48 : vector<1x256xi1> to vector<1x256xi1>
    %50 = vector.broadcast %49 : vector<1x256xi1> to vector<8x256xi1>
    %51 = vector.broadcast %cst_25 : f32 to vector<8x256xf32>
    %52 = arith.select %50, %46, %51 : vector<8x256xi1>, vector<8x256xf32>
    %c0_26 = arith.constant 0 : index
    %c176 = arith.constant 176 : index
    %53 = vector.load %arg7[%c0_26, %c176] : memref<8x512xf32, #tpu.memory_space<vmem>>, vector<8x256xf32>
    %c0_27 = arith.constant 0 : index
    %c179 = arith.constant 179 : index
    %54 = vector.load %arg7[%c0_27, %c179] : memref<8x512xf32, #tpu.memory_space<vmem>>, vector<8x256xf32>
    %c13_i32_28 = arith.constant 13 : i32
    %55 = vector.broadcast %c13_i32_28 : i32 to vector<1x256xi32>
    %56 = arith.cmpi slt, %2, %55 : vector<1x256xi32>
    %cst_29 = arith.constant 0.000000e+00 : f32
    %57 = vector.shape_cast %56 : vector<1x256xi1> to vector<1x256xi1>
    %58 = vector.broadcast %57 : vector<1x256xi1> to vector<8x256xi1>
    %59 = vector.broadcast %cst_29 : f32 to vector<8x256xf32>
    %60 = arith.select %58, %54, %59 : vector<8x256xi1>, vector<8x256xf32>
    %c0_30 = arith.constant 0 : index
    %c26 = arith.constant 26 : index
    %61 = vector.load %arg7[%c0_30, %c26] : memref<8x512xf32, #tpu.memory_space<vmem>>, vector<8x256xf32>
    %c6_i32 = arith.constant 6 : i32
    %62 = vector.broadcast %c6_i32 : i32 to vector<1x256xi32>
    %63 = arith.cmpi sge, %2, %62 : vector<1x256xi32>
    %cst_31 = arith.constant 0.000000e+00 : f32
    %64 = vector.shape_cast %63 : vector<1x256xi1> to vector<1x256xi1>
    %65 = vector.broadcast %64 : vector<1x256xi1> to vector<8x256xi1>
    %66 = vector.broadcast %cst_31 : f32 to vector<8x256xf32>
    %67 = arith.select %65, %61, %66 : vector<8x256xi1>, vector<8x256xf32>
    %c0_32 = arith.constant 0 : index
    %c32 = arith.constant 32 : index
    %68 = vector.load %arg7[%c0_32, %c32] : memref<8x512xf32, #tpu.memory_space<vmem>>, vector<8x256xf32>
    %c0_33 = arith.constant 0 : index
    %c38 = arith.constant 38 : index
    %69 = vector.load %arg7[%c0_33, %c38] : memref<8x512xf32, #tpu.memory_space<vmem>>, vector<8x256xf32>
    %c10_i32 = arith.constant 10 : i32
    %70 = vector.broadcast %c10_i32 : i32 to vector<1x256xi32>
    %71 = arith.cmpi slt, %2, %70 : vector<1x256xi32>
    %cst_34 = arith.constant 0.000000e+00 : f32
    %72 = vector.shape_cast %71 : vector<1x256xi1> to vector<1x256xi1>
    %73 = vector.broadcast %72 : vector<1x256xi1> to vector<8x256xi1>
    %74 = vector.broadcast %cst_34 : f32 to vector<8x256xf32>
    %75 = arith.select %73, %69, %74 : vector<8x256xi1>, vector<8x256xf32>
    %c0_35 = arith.constant 0 : index
    %c122 = arith.constant 122 : index
    %76 = vector.load %arg7[%c0_35, %c122] : memref<8x512xf32, #tpu.memory_space<vmem>>, vector<8x256xf32>
    %c6_i32_36 = arith.constant 6 : i32
    %77 = vector.broadcast %c6_i32_36 : i32 to vector<1x256xi32>
    %78 = arith.cmpi sge, %2, %77 : vector<1x256xi32>
    %cst_37 = arith.constant 0.000000e+00 : f32
    %79 = vector.shape_cast %78 : vector<1x256xi1> to vector<1x256xi1>
    %80 = vector.broadcast %79 : vector<1x256xi1> to vector<8x256xi1>
    %81 = vector.broadcast %cst_37 : f32 to vector<8x256xf32>
    %82 = arith.select %80, %76, %81 : vector<8x256xi1>, vector<8x256xf32>
    %c0_38 = arith.constant 0 : index
    %c128_39 = arith.constant 128 : index
    %83 = vector.load %arg7[%c0_38, %c128_39] : memref<8x512xf32, #tpu.memory_space<vmem>>, vector<8x256xf32>
    %c0_40 = arith.constant 0 : index
    %c134 = arith.constant 134 : index
    %84 = vector.load %arg7[%c0_40, %c134] : memref<8x512xf32, #tpu.memory_space<vmem>>, vector<8x256xf32>
    %c10_i32_41 = arith.constant 10 : i32
    %85 = vector.broadcast %c10_i32_41 : i32 to vector<1x256xi32>
    %86 = arith.cmpi slt, %2, %85 : vector<1x256xi32>
    %cst_42 = arith.constant 0.000000e+00 : f32
    %87 = vector.shape_cast %86 : vector<1x256xi1> to vector<1x256xi1>
    %88 = vector.broadcast %87 : vector<1x256xi1> to vector<8x256xi1>
    %89 = vector.broadcast %cst_42 : f32 to vector<8x256xf32>
    %90 = arith.select %88, %84, %89 : vector<8x256xi1>, vector<8x256xf32>
    %c0_43 = arith.constant 0 : index
    %c218 = arith.constant 218 : index
    %91 = vector.load %arg7[%c0_43, %c218] : memref<8x512xf32, #tpu.memory_space<vmem>>, vector<8x256xf32>
    %c6_i32_44 = arith.constant 6 : i32
    %92 = vector.broadcast %c6_i32_44 : i32 to vector<1x256xi32>
    %93 = arith.cmpi sge, %2, %92 : vector<1x256xi32>
    %cst_45 = arith.constant 0.000000e+00 : f32
    %94 = vector.shape_cast %93 : vector<1x256xi1> to vector<1x256xi1>
    %95 = vector.broadcast %94 : vector<1x256xi1> to vector<8x256xi1>
    %96 = vector.broadcast %cst_45 : f32 to vector<8x256xf32>
    %97 = arith.select %95, %91, %96 : vector<8x256xi1>, vector<8x256xf32>
    %c0_46 = arith.constant 0 : index
    %c224 = arith.constant 224 : index
    %98 = vector.load %arg7[%c0_46, %c224] : memref<8x512xf32, #tpu.memory_space<vmem>>, vector<8x256xf32>
    %c0_47 = arith.constant 0 : index
    %c230 = arith.constant 230 : index
    %99 = vector.load %arg7[%c0_47, %c230] : memref<8x512xf32, #tpu.memory_space<vmem>>, vector<8x256xf32>
    %c10_i32_48 = arith.constant 10 : i32
    %100 = vector.broadcast %c10_i32_48 : i32 to vector<1x256xi32>
    %101 = arith.cmpi slt, %2, %100 : vector<1x256xi32>
    %cst_49 = arith.constant 0.000000e+00 : f32
    %102 = vector.shape_cast %101 : vector<1x256xi1> to vector<1x256xi1>
    %103 = vector.broadcast %102 : vector<1x256xi1> to vector<8x256xi1>
    %104 = vector.broadcast %cst_49 : f32 to vector<8x256xf32>
    %105 = arith.select %103, %99, %104 : vector<8x256xi1>, vector<8x256xf32>
    %106 = tpu.concatenate %15, %4, %22, %23, %30, %37, %38, %45, %52, %53, %60, %67, %68, %75, %82, %83 in 0 : vector<8x256xf32>, vector<8x256xf32>, vector<8x256xf32>, vector<8x256xf32>, vector<8x256xf32>, vector<8x256xf32>, vector<8x256xf32>, vector<8x256xf32>, vector<8x256xf32>, vector<8x256xf32>, vector<8x256xf32>, vector<8x256xf32>, vector<8x256xf32>, vector<8x256xf32>, vector<8x256xf32>, vector<8x256xf32> -> vector<128x256xf32>
    %107 = tpu.concatenate %90, %97, %98, %105 in 0 : vector<8x256xf32>, vector<8x256xf32>, vector<8x256xf32>, vector<8x256xf32> -> vector<32x256xf32>
    %108 = tpu.concatenate %106, %107 in 0 : vector<128x256xf32>, vector<32x256xf32> -> vector<160x256xf32>
    %c0_50 = arith.constant 0 : index
    %c0_51 = arith.constant 0 : index
    %109 = vector.load %arg2[%c0_50, %c0_51] : memref<32x160xbf16, #tpu.memory_space<vmem>>, vector<32x160xbf16>
    %110 = arith.truncf %108 : vector<160x256xf32> to vector<160x256xbf16>
    %cst_52 = arith.constant dense<0.000000e+00> : vector<32x256xf32>
    %111 = tpu.matmul %109, %110, %cst_52 {dimension_numbers = #tpu.dot_dimension_numbers<[1], [0], [0], [1], [0, 0, 1, 1], [], []>} : vector<32x160xbf16>, vector<160x256xbf16>, vector<32x256xf32> -> vector<32x256xf32>
    %c0_53 = arith.constant 0 : index
    %c0_54 = arith.constant 0 : index
    %112 = vector.load %arg4[%c0_53, %c0_54] : memref<32x1xf32, #tpu.memory_space<vmem>>, vector<32x1xf32>
    %113 = vector.broadcast %112 : vector<32x1xf32> to vector<32x256xf32>
    %114 = arith.addf %111, %113 : vector<32x256xf32>
    %cst_55 = arith.constant 0.000000e+00 : f32
    %115 = vector.broadcast %cst_55 : f32 to vector<32x256xf32>
    %116 = arith.maximumf %114, %115 : vector<32x256xf32>
    %c0_56 = arith.constant 0 : index
    %c128_57 = arith.constant 128 : index
    %117 = vector.load %arg8[%c0_56, %c128_57] : memref<32x512xf32, #tpu.memory_space<vmem>>, vector<32x256xf32>
    tpu.vector_store %arg8[%c0_56, %c128_57], %116 {strides = array<i32>} : memref<32x512xf32, #tpu.memory_space<vmem>>, vector<32x256xf32>,
    %c0_58 = arith.constant 0 : index
    %c111 = arith.constant 111 : index
    %118 = vector.load %arg8[%c0_58, %c111] : memref<32x512xf32, #tpu.memory_space<vmem>>, vector<32x256xf32>
    %c1_i32 = arith.constant 1 : i32
    %119 = vector.broadcast %c1_i32 : i32 to vector<1x256xi32>
    %120 = arith.cmpi sge, %2, %119 : vector<1x256xi32>
    %cst_59 = arith.constant 0.000000e+00 : f32
    %121 = vector.shape_cast %120 : vector<1x256xi1> to vector<1x256xi1>
    %122 = vector.broadcast %121 : vector<1x256xi1> to vector<32x256xi1>
    %123 = vector.broadcast %cst_59 : f32 to vector<32x256xf32>
    %124 = arith.select %122, %118, %123 : vector<32x256xi1>, vector<32x256xf32>
    %c0_60 = arith.constant 0 : index
    %c112 = arith.constant 112 : index
    %125 = vector.load %arg8[%c0_60, %c112] : memref<32x512xf32, #tpu.memory_space<vmem>>, vector<32x256xf32>
    %c0_61 = arith.constant 0 : index
    %c113 = arith.constant 113 : index
    %126 = vector.load %arg8[%c0_61, %c113] : memref<32x512xf32, #tpu.memory_space<vmem>>, vector<32x256xf32>
    %c15_i32_62 = arith.constant 15 : i32
    %127 = vector.broadcast %c15_i32_62 : i32 to vector<1x256xi32>
    %128 = arith.cmpi slt, %2, %127 : vector<1x256xi32>
    %cst_63 = arith.constant 0.000000e+00 : f32
    %129 = vector.shape_cast %128 : vector<1x256xi1> to vector<1x256xi1>
    %130 = vector.broadcast %129 : vector<1x256xi1> to vector<32x256xi1>
    %131 = vector.broadcast %cst_63 : f32 to vector<32x256xf32>
    %132 = arith.select %130, %126, %131 : vector<32x256xi1>, vector<32x256xf32>
    %c0_64 = arith.constant 0 : index
    %c127 = arith.constant 127 : index
    %133 = vector.load %arg8[%c0_64, %c127] : memref<32x512xf32, #tpu.memory_space<vmem>>, vector<32x256xf32>
    %c1_i32_65 = arith.constant 1 : i32
    %134 = vector.broadcast %c1_i32_65 : i32 to vector<1x256xi32>
    %135 = arith.cmpi sge, %2, %134 : vector<1x256xi32>
    %cst_66 = arith.constant 0.000000e+00 : f32
    %136 = vector.shape_cast %135 : vector<1x256xi1> to vector<1x256xi1>
    %137 = vector.broadcast %136 : vector<1x256xi1> to vector<32x256xi1>
    %138 = vector.broadcast %cst_66 : f32 to vector<32x256xf32>
    %139 = arith.select %137, %133, %138 : vector<32x256xi1>, vector<32x256xf32>
    %c0_67 = arith.constant 0 : index
    %c128_68 = arith.constant 128 : index
    %140 = vector.load %arg8[%c0_67, %c128_68] : memref<32x512xf32, #tpu.memory_space<vmem>>, vector<32x256xf32>
    %c0_69 = arith.constant 0 : index
    %c129 = arith.constant 129 : index
    %141 = vector.load %arg8[%c0_69, %c129] : memref<32x512xf32, #tpu.memory_space<vmem>>, vector<32x256xf32>
    %c15_i32_70 = arith.constant 15 : i32
    %142 = vector.broadcast %c15_i32_70 : i32 to vector<1x256xi32>
    %143 = arith.cmpi slt, %2, %142 : vector<1x256xi32>
    %cst_71 = arith.constant 0.000000e+00 : f32
    %144 = vector.shape_cast %143 : vector<1x256xi1> to vector<1x256xi1>
    %145 = vector.broadcast %144 : vector<1x256xi1> to vector<32x256xi1>
    %146 = vector.broadcast %cst_71 : f32 to vector<32x256xf32>
    %147 = arith.select %145, %141, %146 : vector<32x256xi1>, vector<32x256xf32>
    %c0_72 = arith.constant 0 : index
    %c143 = arith.constant 143 : index
    %148 = vector.load %arg8[%c0_72, %c143] : memref<32x512xf32, #tpu.memory_space<vmem>>, vector<32x256xf32>
    %c1_i32_73 = arith.constant 1 : i32
    %149 = vector.broadcast %c1_i32_73 : i32 to vector<1x256xi32>
    %150 = arith.cmpi sge, %2, %149 : vector<1x256xi32>
    %cst_74 = arith.constant 0.000000e+00 : f32
    %151 = vector.shape_cast %150 : vector<1x256xi1> to vector<1x256xi1>
    %152 = vector.broadcast %151 : vector<1x256xi1> to vector<32x256xi1>
    %153 = vector.broadcast %cst_74 : f32 to vector<32x256xf32>
    %154 = arith.select %152, %148, %153 : vector<32x256xi1>, vector<32x256xf32>
    %c0_75 = arith.constant 0 : index
    %c144 = arith.constant 144 : index
    %155 = vector.load %arg8[%c0_75, %c144] : memref<32x512xf32, #tpu.memory_space<vmem>>, vector<32x256xf32>
    %c0_76 = arith.constant 0 : index
    %c145 = arith.constant 145 : index
    %156 = vector.load %arg8[%c0_76, %c145] : memref<32x512xf32, #tpu.memory_space<vmem>>, vector<32x256xf32>
    %c15_i32_77 = arith.constant 15 : i32
    %157 = vector.broadcast %c15_i32_77 : i32 to vector<1x256xi32>
    %158 = arith.cmpi slt, %2, %157 : vector<1x256xi32>
    %cst_78 = arith.constant 0.000000e+00 : f32
    %159 = vector.shape_cast %158 : vector<1x256xi1> to vector<1x256xi1>
    %160 = vector.broadcast %159 : vector<1x256xi1> to vector<32x256xi1>
    %161 = vector.broadcast %cst_78 : f32 to vector<32x256xf32>
    %162 = arith.select %160, %156, %161 : vector<32x256xi1>, vector<32x256xf32>
    %163 = tpu.concatenate %124, %125, %132, %139, %140, %147, %154, %155, %162 in 0 : vector<32x256xf32>, vector<32x256xf32>, vector<32x256xf32>, vector<32x256xf32>, vector<32x256xf32>, vector<32x256xf32>, vector<32x256xf32>, vector<32x256xf32>, vector<32x256xf32> -> vector<288x256xf32>
    %c0_79 = arith.constant 0 : index
    %c0_80 = arith.constant 0 : index
    %164 = vector.load %arg3[%c0_79, %c0_80] : memref<8x288xbf16, #tpu.memory_space<vmem>>, vector<8x288xbf16>
    %165 = arith.truncf %163 : vector<288x256xf32> to vector<288x256xbf16>
    %cst_81 = arith.constant dense<0.000000e+00> : vector<8x256xf32>
    %166 = tpu.matmul %164, %165, %cst_81 {dimension_numbers = #tpu.dot_dimension_numbers<[1], [0], [0], [1], [0, 0, 1, 1], [], []>} : vector<8x288xbf16>, vector<288x256xbf16>, vector<8x256xf32> -> vector<8x256xf32>
    %c0_82 = arith.constant 0 : index
    %c0_83 = arith.constant 0 : index
    %167 = vector.load %arg5[%c0_82, %c0_83] : memref<8x1xf32, #tpu.memory_space<vmem>>, vector<8x1xf32>
    %168 = vector.broadcast %167 : vector<8x1xf32> to vector<8x256xf32>
    %169 = arith.addf %166, %168 : vector<8x256xf32>
    %cst_84 = arith.constant 0.000000e+00 : f32
    %170 = vector.broadcast %cst_84 : f32 to vector<8x256xf32>
    %171 = arith.maximumf %169, %170 : vector<8x256xf32>
    %c0_85 = arith.constant 0 : index
    %c0_86 = arith.constant 0 : index
    %c0_87 = arith.constant 0 : index
    %172 = vector.load %arg6[%c0_85, %c0_86, %c0_87] : memref<1x8x256xf32, #tpu.memory_space<vmem>>, vector<1x8x256xf32>
    %173 = vector.shape_cast %172 : vector<1x8x256xf32> to vector<8x256xf32>
    %174 = vector.shape_cast %171 : vector<8x256xf32> to vector<1x8x256xf32>
    tpu.vector_store %arg6[%c0_85, %c0_86, %c0_87], %174 {strides = array<i32>} : memref<1x8x256xf32, #tpu.memory_space<vmem>>, vector<1x8x256xf32>,
    return
  }
  func.func @transform_0(%arg0: i32) -> (i32, i32, i32) {
    %c0_i32 = arith.constant 0 : i32
    %c0_i32_0 = arith.constant 0 : i32
    %c0_i32_1 = arith.constant 0 : i32
    return %arg0, %c0_i32, %c0_i32_0 : i32, i32, i32
  }
  func.func @transform_1(%arg0: i32) -> (i32, i32) {
    %c0_i32 = arith.constant 0 : i32
    %c0_i32_0 = arith.constant 0 : i32
    %c0_i32_1 = arith.constant 0 : i32
    return %c0_i32, %c0_i32_0 : i32, i32
  }
  func.func @transform_2(%arg0: i32) -> (i32, i32) {
    %c0_i32 = arith.constant 0 : i32
    %c0_i32_0 = arith.constant 0 : i32
    %c0_i32_1 = arith.constant 0 : i32
    return %c0_i32, %c0_i32_0 : i32, i32
  }
  func.func @transform_3(%arg0: i32) -> (i32, i32) {
    %c0_i32 = arith.constant 0 : i32
    %c0_i32_0 = arith.constant 0 : i32
    %c0_i32_1 = arith.constant 0 : i32
    return %c0_i32, %c0_i32_0 : i32, i32
  }
  func.func @transform_4(%arg0: i32) -> (i32, i32) {
    %c0_i32 = arith.constant 0 : i32
    %c0_i32_0 = arith.constant 0 : i32
    %c0_i32_1 = arith.constant 0 : i32
    return %c0_i32, %c0_i32_0 : i32, i32
  }
  func.func @transform_5(%arg0: i32) -> (i32, i32, i32) {
    %c0_i32 = arith.constant 0 : i32
    %c0_i32_0 = arith.constant 0 : i32
    %c0_i32_1 = arith.constant 0 : i32
    return %arg0, %c0_i32, %c0_i32_0 : i32, i32, i32
  }
}

</mosaic_0001>

<bundles_post_ra>
// kernel: aspp_wrapper_forward.1
= control target key start
LH: loop header
LB: loop body
LE: loop exit
PB: predicated region body
PF: predicated region fallthrough
CT: control target
= control target key end

     0   :  { %s1855_s18 = smov 0   ;;  %s2379_s0 = inlined_call_operand.vmem [shape: f32[2,8,256], index: 0, kind: input, shape index: {}]   ;;  %s2380_s1 = inlined_call_operand.vmem [shape: bf16[32,160], index: 1, kind: input, shape index: {}]   ;;  %s2381_s2 = inlined_call_operand.vmem [shape: bf16[8,288], index: 2, kind: input, shape index: {}]   ;;  %s2382_s3 = inlined_call_operand.vmem [shape: f32[32,1], index: 3, kind: input, shape index: {}]   ;;  %s2383_s4 = inlined_call_operand.vmem [shape: f32[8,1], index: 4, kind: input, shape index: {}]   ;;  %s2384_s5 = inlined_call_operand.vmem [shape: f32[2,8,256], index: 5, kind: output, shape index: {}]  }
   0x1 LB: > { %s1271_s19 = sadd.s32 4294967295, %s1796_s18   ;;  %p1275_p0 = scmp.ge.s32.totalorder %s1796_s18, 1  ;;  %s1796_s18 = sphi %s1855_s18, %s15_s18  }
   0x2   : > { %p187_p1 = scmp.lt.s32.totalorder %s1796_s18, 3 }
   0x4   : > { %p188_p2 = pnand %p1275_p0, %p187_p1 }
   0x5   : > { %p215_p3 = scmp.lt.s32.totalorder (!%p188_p2), %s1271_s19, 1  ;;  %s1798_s24 = smov (!%p188_p2), 48   ;;  %v1799_v4 = vmov (!%p188_p2), 0.0   ;;  %v1783_v6 = vld [vmem:[%s2380_s1 + $0x4] ss:$8 sps:$4 sm:$0xff] (!%p188_p2)   ;;  %vm491_vm0 = vcmask (!%p188_p2), 261120   ;;  %v226_v16 = vlaneseq (!%p188_p2) }
   0x6   : > { %191 = sbr.rel (%p188_p2) target bundleno = 857 (0x359), region = 40  ;;  %s1800_s25 = smov (!%p188_p2), 51   ;;  %1338 = vmatprep.mubr.msk.bf16.mxu0 (!%p188_p2), %vm491_vm0, %v1783_v6  ;;  %v520_v7 = vld [vmem:[%s2382_s3] sm:$0xff] (!%p188_p2)  ;;  %v521_v8 = vld [vmem:[%s2382_s3 + $0x8] sm:$0xff] (!%p188_p2)  ;;  %v1815_v9 = vmov (!%p188_p2), 0   ;;  %v523_v10 = vld [vmem:[%s2382_s3 + $0x18] sm:$0xff] (!%p188_p2) }
   0x7   : > { %s1801_s26 = smov (!%p188_p2), 45   ;;  %s1802_s27 = smov (!%p188_p2), 3   ;;  %1539 = vset.pattern.permute.xlu0 (!%p188_p2), %v1815_v9  ;;  %1540 = vset.pattern.permute.xlu1 (!%p188_p2), %v1815_v9  ;;  %v522_v11 = vld [vmem:[%s2382_s3 + $0x10] sm:$0xff] (!%p188_p2)  ;;  %v227_v18 = vand.u32 (!%p188_p2), 127, %v226_v16  ;;  %vm458_vm1 = vcmask (!%p188_p2), 392192   ;;  %vm297_vm2 = vcmask (!%p188_p2), 367616  }
   0x8   : > { %s1803_s28 = smov (!%p188_p2), 125   ;;  %s1804_s29 = smov (!%p188_p2), 83   ;;  %vm310_vm3 = vcmask (!%p188_p2), 23552   ;;  %vm278_vm4 = vcmask (!%p188_p2), 416768   ;;  %vm1819_vm8 = vmmov (!%p188_p2), 1   ;;  %vm329_vm10 = vcmask (!%p188_p2), 1022976  }
   0x9   : > { %s1805_s30 = smov (!%p188_p2), 80   ;;  %s1806_s6 = smov (!%p188_p2), 77   ;;  %v228_v20 = vadd.s32 (!%p188_p2), 128, %v227_v18  ;;  %v1927_v26 = vand.u32 (!%p188_p2), 15, %v227_v18  ;;  %vm469_vm14 = vcmask (!%p188_p2), 654336  }
   0xa   : > { %s1807_s7 = smov (!%p188_p2), 102   ;;  %s1808_s8 = smov (!%p188_p2), 90  }
   0xb   : > { %s1809_s9 = smov (!%p188_p2), 96   ;;  %s1810_s10 = smov (!%p188_p2), 6   ;;  %v1925_v23 = vand.u32 (!%p188_p2), 15, %v228_v20  ;;  %vm263_vm6 = vcmp.ge.s32.totalorder (!%p188_p2), %v1927_v26, 3  ;;  %vm285_vm13 = vcmp.lt.s32.totalorder (!%p188_p2), %v1927_v26, 13 }
   0xc   : > { %s1811_s11 = smov (!%p188_p2), 122   ;;  %s1812_s12 = smov (!%p188_p2), 38   ;;  %vm1948_vm11 = vmpackc.low (!%p188_p2), %vm1819_vm8, %vm263_vm6 }
   0xd   : > { %s2402_s19 = smov (!%p215_p3, %s1271_s19), 1  ;;  %s1813_s13 = smov 26   ;;  %vm264_vm5 = vcmp.ge.s32.totalorder %v1925_v23, 3  ;;  %vm286_vm7 = vcmp.lt.s32.totalorder %v1925_v23, 13  ;;  %vm1293_vm15 = vmpackc.low %vm263_vm6, %vm285_vm13  ;;  %vm363_vm6 = vcmp.ge.s32.totalorder %v1925_v23, 6 }
   0xe   : > { %s1418_s20 = sshll.u32 %s2402_s19, 4  ;;  %s1814_s14 = smov 32   ;;  %vm1941_vm9 = vmpackc.low %vm1819_vm8, %vm264_vm5 }
   0xf   : > { %s219_s23 = scalar_lea.vmem %s2379_s0, %s1418_s20  ;;  %vm1290_vm12 = vmpackc.low %vm264_vm5, %vm286_vm7  ;;  %vm355_vm5 = vcmask 629760   ;;  %s1823_s15 = smov 112  }
  0x10   : > { %v1871_v0 = vld [vmem:[%s219_s23] sm:$0xff]  ;;  %v1873_v1 = vld [vmem:[%s219_s23 + $0x8] sm:$0xff]  ;;  %s1824_s16 = smov 111  }
  0x11   : > { %v1464_v2 = vpack.i.bf16 %v1873_v1, %v1871_v0  ;;  %v255_v3 = vadd.f32 %v1873_v1, %v1871_v0  ;;  %v1479_v5 = vpack.i.bf16 %v1799_v4, %v1873_v1 }
  0x13   : > { %1465 = vrot.lane.b32.xlu1 %v1464_v2, %s1798_s24  ;;  %256 = vadd.xlane.f32.xlu0 %v255_v3 }
  0x17   : > { %272 = vrot.lane.b32.xlu1 %v1799_v4, %s1800_s25 }
  0x1b   : > { %452 = vrot.lane.b32.xlu1 %v1799_v4, %s1798_s24 }
  0x1f   : > { %1470 = vrot.lane.b32.xlu1 %v1464_v2, %s1801_s26 }
  0x23   : > { %1475 = vrot.lane.b32.xlu1 %v1464_v2, %s1802_s27 }
  0x27   : > { %291 = vrot.lane.b32.xlu1 %v1799_v4, %s1801_s26 }
  0x29   : > { %1460 = vrot.lane.b32.xlu0 %v1464_v2, %s1800_s25 }
  0x2b   : > { %304 = vrot.lane.b32.xlu1 %v1799_v4, %s1802_s27 }
  0x2d   : > { %1480 = vrot.lane.b32.xlu0 %v1479_v5, %s1803_s28 }
  0x2f   : > { %323 = vrot.lane.b32.xlu1 %v1871_v0, %s1803_s28  ;;  %s1816_s28 = smov 17  }
  0x31   : > { %1485 = vrot.lane.b32.xlu0 %v1479_v5, %s1804_s29 }
  0x33   : > { %1490 = vrot.lane.b32.xlu1 %v1479_v5, %s1805_s30 }
  0x35   : > { %336 = vrot.lane.b32.xlu0 %v1871_v0, %s1804_s29  ;;  %s1817_s29 = smov 16  }
  0x37   : > { %463 = vrot.lane.b32.xlu1 %v1871_v0, %s1805_s30  ;;  %s1818_s30 = smov 15  }
  0x39   : > { %1495 = vrot.lane.b32.xlu0 %v1479_v5, %s1806_s6 }
  0x3b   : > { %1500 = vrot.lane.b32.xlu1 %v1464_v2, %s1807_s7 }
  0x3d   : > { %349 = vrot.lane.b32.xlu0 %v1871_v0, %s1806_s6 }
  0x3f   : > { %368 = vrot.lane.b32.xlu1 %v1799_v4, %s1807_s7 }
  0x41   : > { %1505 = vrot.lane.b32.xlu0 %v1464_v2, %s1808_s8 }
  0x43   : > { %1510 = vrot.lane.b32.xlu1 %v1464_v2, %s1809_s9 }
  0x45   : > { %387 = vrot.lane.b32.xlu0 %v1799_v4, %s1808_s8 }
  0x47   : > { %474 = vrot.lane.b32.xlu1 %v1799_v4, %s1809_s9 }
  0x49   : > { %1515 = vrot.lane.b32.xlu0 %v1464_v2, %s1810_s10 }
  0x4b   : > { %400 = vrot.lane.b32.xlu1 %v1799_v4, %s1810_s10 }
  0x4d   : > { %1520 = vrot.lane.b32.xlu0 %v1479_v5, %s1811_s11 }
  0x4f   : > { %1525 = vrot.lane.b32.xlu1 %v1479_v5, %s1812_s12 }
  0x51   : > { %413 = vrot.lane.b32.xlu0 %v1871_v0, %s1811_s11 }
  0x53   : > { %426 = vrot.lane.b32.xlu1 %v1871_v0, %s1812_s12  ;;  %s1820_s12 = smov 1  }
  0x55   : > { %1530 = vrot.lane.b32.xlu0 %v1479_v5, %s1813_s13 }
  0x57   : > { %1535 = vrot.lane.b32.xlu1 %v1479_v5, %s1814_s14 }
  0x59   : > { %439 = vrot.lane.b32.xlu0 %v1871_v0, %s1813_s13  ;;  %s1821_s13 = smov 127  }
  0x5b   : > { %485 = vrot.lane.b32.xlu1 %v1871_v0, %s1814_s14  ;;  %s1822_s14 = smov 113  }
  0x5d   : > { %526 = vperm.xlu0 %1539, %v520_v7  }
  0x5f   : > { %531 = vperm.xlu1 %1540, %v521_v8  }
  0x61   : > { %541 = vperm.xlu0 %1539, %v523_v10  }
  0x63   : > { %536 = vperm.xlu1 %1540, %v522_v11  }
  0x65   : > { %1547 = vrot.lane.b32.xlu0 %v1799_v4, %s1816_s28 }
  0x67   : > { %1542 = vrot.lane.b32.xlu1 %v1799_v4, %s1816_s28 }
  0x69   : > { %1557 = vrot.lane.b32.xlu0 %v1799_v4, %s1817_s29 }
  0x6b   : > { %1552 = vrot.lane.b32.xlu1 %v1799_v4, %s1817_s29 }
  0x6d   : > { %1567 = vrot.lane.b32.xlu0 %v1799_v4, %s1818_s30 }
  0x6f   : > { %1562 = vrot.lane.b32.xlu1 %v1799_v4, %s1818_s30 }
  0x71   : > { %1577 = vrot.lane.b32.xlu0 %v1799_v4, %s1820_s12 }
  0x73   : > { %1572 = vrot.lane.b32.xlu1 %v1799_v4, %s1820_s12 }
  0x85   : > { %v1466_v12 = vpop.permute.xlu1 %1465 }
  0x86   : > { %v1468_v27 = vunpack.i.h.bf16 %v1466_v12  ;;  %v1467_v28 = vunpack.i.l.bf16 %v1466_v12 }
  0x88   : > { %v460_v40 = vsel %vm458_vm1, %v1467_v28, %v1468_v27 }
  0x89   : > { %v273_v13 = vpop.permute.xlu1 %272 }
  0x8d   : > { %v453_v14 = vpop.permute.xlu1 %452 }
  0x8e   : > { %v459_v39 = vsel %vm458_vm1, %v453_v14, %v1467_v28  ;;  %vm342_vm1 = vcmask 678912  }
  0x91   : > { %v1471_v15 = vpop.permute.xlu1 %1470 }
  0x92   : > { %v1473_v29 = vunpack.i.h.bf16 %v1471_v15  ;;  %v1472_v30 = vunpack.i.l.bf16 %v1471_v15 }
  0x94   : > { %v299_v41 = vsel %vm297_vm2, %v1472_v30, %v1473_v29 }
  0x95   : > { %v1476_v17 = vpop.permute.xlu1 %1475 }
  0x96   : > { %v1478_v31 = vunpack.i.h.bf16 %v1476_v17  ;;  %v1477_v32 = vunpack.i.l.bf16 %v1476_v17 }
  0x98   : > { %v312_v42 = vsel %vm310_vm3, %v1477_v32, %v1478_v31 }
  0x99   : > { %v292_v19 = vpop.permute.xlu1 %291  ;;  %v1291_v54 = vpack.c.bf16 %v312_v42, %v299_v41 }
  0x9a   : > { %v298_v58 = vsel %vm297_vm2, %v292_v19, %v1472_v30  ;;  %vm1299_vm2 = vmpackc.low %vm285_vm13, %vm1819_vm8 }
  0x9d   : > { %v305_v21 = vpop.permute.xlu1 %304 }
  0x9e   : > { %v311_v53 = vsel %vm310_vm3, %v305_v21, %v1477_v32  ;;  %vm1296_vm3 = vmpackc.low %vm286_vm7, %vm1819_vm8 }
  0x9f   : > { %v1294_v60 = vpack.c.bf16 %v311_v53, %v298_v58 }
  0xa0   : > { %v257_v22 = vpop.xlane.xlu0 %256 }
  0xa1   : > { %v259_v24 = vmul.f32 0.00390625, %v257_v22  ;;  %v324_v25 = vpop.permute.xlu1 %323 }
  0xa3   : > { %v501_v33 = vpack.c.bf16 %v1873_v1, %v259_v24  ;;  %v500_v34 = vpack.c.bf16 %v1871_v0, %v259_v24 }
  0xa4   : > { %v1461_v35 = vpop.permute.xlu0 %1460 }
  0xa5   : > { %v1463_v36 = vunpack.i.h.bf16 %v1461_v35  ;;  %v1462_v37 = vunpack.i.l.bf16 %v1461_v35  ;;  %568 = vmatprep.subr.bf16.mxu0 %v501_v33  ;;  %v1491_v38 = vpop.permute.xlu1 %1490 }
  0xa6   : > { %569 = vmatpush1.bf16.msra.mxu0 %v500_v34  ;;  %v1493_v56 = vunpack.i.h.bf16 %v1491_v38  ;;  %v1492_v57 = vunpack.i.l.bf16 %v1491_v38 }
  0xa7   : > { %v279_v43 = vsel %vm278_vm4, %v273_v13, %v1462_v37  ;;  %v280_v44 = vsel %vm278_vm4, %v1462_v37, %v1463_v36  ;;  %vm374_vm4 = vcmask 834560  }
  0xa8   : > { %v1285_v46 = vpack.c.bf16 %v460_v40, %v280_v44  ;;  %v1288_v47 = vpack.c.bf16 %v459_v39, %v279_v43  ;;  %v1481_v48 = vpop.permute.xlu0 %1480  ;;  %v471_v5 = vsel %vm469_vm14, %v1492_v57, %v1493_v56 }
  0xa9   : > { %v1483_v50 = vunpack.i.h.bf16 %v1481_v48  ;;  %v1482_v51 = vunpack.i.l.bf16 %v1481_v48  ;;  %v464_v52 = vpop.permute.xlu1 %463 }
  0xaa   : > { %1286 = vmatprep.subr.msk.bf16.mxu0 %vm1941_vm9, %v1285_v46  ;;  %v470_v15 = vsel %vm469_vm14, %v464_v52, %v1492_v57  ;;  %vm393_vm14 = vcmask 736256  }
  0xab   : > { %v331_v55 = vsel %vm329_vm10, %v1482_v51, %v1483_v50  ;;  %1289 = vmatpush1.bf16.msk.msra.mxu0 %vm1948_vm11, %v1288_v47  ;;  %v330_v2 = vsel %vm329_vm10, %v324_v25, %v1482_v51  ;;  %vm362_vm10 = vcmp.ge.s32.totalorder %v1927_v26, 6 }
  0xac   : > { %v1486_v59 = vpop.permute.xlu0 %1485  ;;  %1292 = vmatprep.subr.msk.bf16.mxu0 %vm1290_vm12, %v1291_v54  ;;  %v1297_v3 = vpack.c.bf16 %v331_v55, %v1873_v1  ;;  %v1300_v8 = vpack.c.bf16 %v330_v2, %v1871_v0  ;;  %vm1311_vm12 = vmpackc.low %vm362_vm10, %vm285_vm13 }
  0xad   : > { %v1488_v61 = vunpack.i.h.bf16 %v1486_v59  ;;  %v1487_v62 = vunpack.i.l.bf16 %v1486_v59  ;;  %v1501_v63 = vpop.permute.xlu1 %1500 }
  0xae   : > { %v1503_v10 = vunpack.i.h.bf16 %v1501_v63  ;;  %v1502_v11 = vunpack.i.l.bf16 %v1501_v63 }
  0xaf   : > { %1295 = vmatpush1.bf16.msk.msra.mxu0 %vm1293_vm15, %v1294_v60  ;;  %v344_v6 = vsel %vm342_vm1, %v1487_v62, %v1488_v61  ;;  %vm381_vm15 = vcmp.lt.s32.totalorder %v1927_v26, 10 }
  0xb0   : > { %v337_v7 = vpop.permute.xlu0 %336  ;;  %1298 = vmatprep.subr.msk.bf16.mxu0 %vm1296_vm3, %v1297_v3  ;;  %v1303_v14 = vpack.c.bf16 %v471_v5, %v344_v6  ;;  %v376_v20 = vsel %vm374_vm4, %v1502_v11, %v1503_v10  ;;  %vm406_vm3 = vcmask 48128  }
  0xb1   : > { %v369_v12 = vpop.permute.xlu1 %368  ;;  %v343_v13 = vsel %vm342_vm1, %v337_v7, %v1487_v62  ;;  %vm2009_vm1 = vmpackc.low %vm381_vm15, %vm1819_vm8 }
  0xb2   : > { %v1306_v17 = vpack.c.bf16 %v470_v15, %v343_v13  ;;  %v375_v27 = vsel %vm374_vm4, %v369_v12, %v1502_v11  ;;  %vm1320_vm4 = vmpackc.low %vm1819_vm8, %vm363_vm6 }
  0xb3   : > { %1301 = vmatpush1.bf16.msk.msra.mxu0 %vm1299_vm2, %v1300_v8  ;;  %vm432_vm2 = vcmask 310272  }
  0xb4   : > { %v1496_v16 = vpop.permute.xlu0 %1495  ;;  %1304 = vmatprep.subr.msk.bf16.mxu0 %vm1941_vm9, %v1303_v14  ;;  %vm1308_vm9 = vmpackc.low %vm363_vm6, %vm286_vm7  ;;  %vm382_vm7 = vcmp.lt.s32.totalorder %v1925_v23, 10 }
  0xb5   : > { %v1498_v18 = vunpack.i.h.bf16 %v1496_v16  ;;  %v1497_v19 = vunpack.i.l.bf16 %v1496_v16  ;;  %v1511_v21 = vpop.permute.xlu1 %1510  ;;  %vm2002_vm13 = vmpackc.low %vm382_vm7, %vm1819_vm8 }
  0xb6   : > { %v1513_v29 = vunpack.i.h.bf16 %v1511_v21  ;;  %v1512_v30 = vunpack.i.l.bf16 %v1511_v21  ;;  %v1786_v21 = vld [vmem:[%s2380_s1 + $0x10] ss:$8 sps:$4 sm:$0xff]  }
  0xb7   : > { %1307 = vmatpush1.bf16.msk.msra.mxu0 %vm1948_vm11, %v1306_v17  ;;  %v357_v22 = vsel %vm355_vm5, %v1497_v19, %v1498_v18  ;;  %vm480_vm11 = vcmask 785408  }
  0xb8   : > { %v350_v24 = vpop.permute.xlu0 %349  ;;  %v1309_v25 = vpack.c.bf16 %v376_v20, %v357_v22  ;;  %v482_v36 = vsel %vm480_vm11, %v1512_v30, %v1513_v29  ;;  %v1784_v20 = vld [vmem:[%s2380_s1 + $0x14] ss:$8 sps:$4 sm:$0xff]  }
  0xb9   : > { %v356_v28 = vsel %vm355_vm5, %v350_v24, %v1497_v19  ;;  %v475_v31 = vpop.permute.xlu1 %474  ;;  %vm1323_vm5 = vmpackc.low %vm1819_vm8, %vm362_vm10  ;;  %v1781_v19 = vld [vmem:[%s2380_s1] ss:$8 sps:$4 sm:$0xff]  }
  0xba   : > { %v1312_v32 = vpack.c.bf16 %v375_v27, %v356_v28  ;;  %1310 = vmatprep.subr.msk.bf16.mxu0 %vm1308_vm9, %v1309_v25  ;;  %v481_v42 = vsel %vm480_vm11, %v475_v31, %v1512_v30  ;;  %vm419_vm9 = vcmask 998400   ;;  %vm1329_vm8 = vmpackc.low %vm362_vm10, %vm381_vm15  ;;  %vm445_vm11 = vcmask 211968  }
  0xbb   : > { %vm691_vm10 = vcmask 138240  }
  0xbc   : > { %v1506_v33 = vpop.permute.xlu0 %1505  ;;  %1313 = vmatpush1.bf16.msk.msra.mxu0 %vm1311_vm12, %v1312_v32  ;;  %vm1326_vm12 = vmpackc.low %vm363_vm6, %vm382_vm7  ;;  %vm650_vm6 = vcmp.ge.s32.totalorder %v1925_v23, 1 }
  0xbd   : > { %v1508_v34 = vunpack.i.h.bf16 %v1506_v33  ;;  %v1507_v35 = vunpack.i.l.bf16 %v1506_v33  ;;  %v401_v37 = vpop.permute.xlu1 %400  ;;  %vm2150_vm7 = vmpackc.low %vm650_vm6, %vm650_vm6  ;;  %vm1056_vm6 = vcmask 916480  }
  0xbf   : > { %v395_v38 = vsel %vm393_vm14, %v1507_v35, %v1508_v34 }
  0xc0   : > { %v388_v40 = vpop.permute.xlu0 %387  ;;  %v1315_v41 = vpack.c.bf16 %v395_v38, %v482_v36 }
  0xc1   : > { %v394_v43 = vsel %vm393_vm14, %v388_v40, %v1507_v35  ;;  %v1526_v45 = vpop.permute.xlu1 %1525  ;;  %vm649_vm14 = vcmp.ge.s32.totalorder %v1927_v26, 1 }
  0xc2   : > { %v1318_v46 = vpack.c.bf16 %v394_v43, %v481_v42  ;;  %1316 = vmatprep.subr.msk.bf16.mxu0 %vm2002_vm13, %v1315_v41  ;;  %v1528_v50 = vunpack.i.h.bf16 %v1526_v45  ;;  %v1527_v51 = vunpack.i.l.bf16 %v1526_v45  ;;  %vm2156_vm15 = vmpackc.low %vm649_vm14, %vm649_vm14 }
  0xc4   : > { %v1516_v47 = vpop.permute.xlu0 %1515  ;;  %1319 = vmatpush1.bf16.msk.msra.mxu0 %vm2009_vm1, %v1318_v46  ;;  %v434_v60 = vsel %vm432_vm2, %v1527_v51, %v1528_v50 }
  0xc5   : > { %v1518_v48 = vunpack.i.h.bf16 %v1516_v47  ;;  %v1517_v49 = vunpack.i.l.bf16 %v1516_v47  ;;  %v427_v52 = vpop.permute.xlu1 %426 }
  0xc6   : > { %v433_v63 = vsel %vm432_vm2, %v427_v52, %v1527_v51  ;;  %vm716_vm2 = vcmp.lt.s32.totalorder %v1927_v26, 15 }
  0xc7   : > { %v407_v53 = vsel %vm406_vm3, %v401_v37, %v1517_v49  ;;  %v408_v54 = vsel %vm406_vm3, %v1517_v49, %v1518_v48  ;;  %vm717_vm3 = vcmp.lt.s32.totalorder %v1925_v23, 15 }
  0xc8   : > { %v1321_v55 = vpack.c.bf16 %v1873_v1, %v408_v54  ;;  %v1324_v56 = vpack.c.bf16 %v1871_v0, %v407_v53  ;;  %v1521_v57 = vpop.permute.xlu0 %1520 }
  0xc9   : > { %v1523_v58 = vunpack.i.h.bf16 %v1521_v57  ;;  %v1522_v59 = vunpack.i.l.bf16 %v1521_v57  ;;  %v1536_v62 = vpop.permute.xlu1 %1535 }
  0xca   : > { %1322 = vmatprep.subr.msk.bf16.mxu0 %vm1320_vm4, %v1321_v55  ;;  %v1538_v3 = vunpack.i.h.bf16 %v1536_v62  ;;  %v1537_v5 = vunpack.i.l.bf16 %v1536_v62  ;;  %vm2207_vm4 = vmpackc.low %vm717_vm3, %vm717_vm3 }
  0xcb   : > { %1325 = vmatpush1.bf16.msk.msra.mxu0 %vm1323_vm5, %v1324_v56  ;;  %v421_v61 = vsel %vm419_vm9, %v1522_v59, %v1523_v58  ;;  %vm2225_vm5 = vmpackc.low %vm716_vm2, %vm716_vm2 }
  0xcc   : > { %v414_v1 = vpop.permute.xlu0 %413  ;;  %v1327_v0 = vpack.c.bf16 %v434_v60, %v421_v61  ;;  %v493_v8 = vsel %vm491_vm0, %v1537_v5, %v1538_v3 }
  0xcd   : > { %v420_v2 = vsel %vm419_vm9, %v414_v1, %v1522_v59  ;;  %v486_v12 = vpop.permute.xlu1 %485  ;;  %vm795_vm9 = vcmask 7168  }
  0xce   : > { %v1330_v6 = vpack.c.bf16 %v433_v63, %v420_v2  ;;  %1328 = vmatprep.subr.msk.bf16.mxu0 %vm1326_vm12, %v1327_v0  ;;  %v492_v16 = vsel %vm491_vm0, %v486_v12, %v1537_v5  ;;  %v2127_v63 = vld [vmem:[%s2381_s2] sm:$0xff]  ;;  %vm868_vm12 = vcmask 1039360  }
  0xcf   : > { %v1341_v2 = vcombine.high %v2127_v63, %v2127_v63 }
  0xd0   : > { %v1531_v7 = vpop.permute.xlu0 %1530  ;;  %1331 = vmatpush1.bf16.msk.msra.mxu0 %vm1329_vm8, %v1330_v6  ;;  %vm917_vm8 = vcmask 924672  }
  0xd1   : > { %v1533_v10 = vunpack.i.h.bf16 %v1531_v7  ;;  %v1532_v11 = vunpack.i.l.bf16 %v1531_v7  ;;  %1162 = vmatprep.mubr.bf16.mxu1 %v1341_v2 }
  0xd3   : > { %v447_v13 = vsel %vm445_vm11, %v1532_v11, %v1533_v10 }
  0xd4   : > { %v440_v14 = vpop.permute.xlu0 %439  ;;  %v1333_v15 = vpack.c.bf16 %v447_v13, %v493_v8 }
  0xd5   : > { %v446_v17 = vsel %vm445_vm11, %v440_v14, %v1532_v11  ;;  %vm966_vm11 = vcmask 908288  }
  0xd6   : > { %v1336_v18 = vpack.c.bf16 %v446_v17, %v492_v16  ;;  %1334 = vmatprep.subr.msk.bf16.mxu0 %vm2002_vm13, %v1333_v15  ;;  %vm1015_vm13 = vcmask 130048  }
  0xd8   : > { %1337 = vmatpush1.bf16.msk.msra.mxu0 %vm2009_vm1, %v1336_v18  ;;  %vm746_vm1 = vcmask 121856  }
  0xdb   : > { %601 = vmatmul.mubr.bf16.vlgmr.msra.gmra.mrb[0].mxu0 %v1781_v19 }
  0xdc   : > { %1339 = vmatprep.mubr.msk.bf16.mxu0 %vm491_vm0, %v1784_v20  ;;  %v527_v22 = vpop.permute.xlu0 %526 }
  0xde   : > { %v532_v28 = vpop.permute.xlu1 %531 }
  0xe0   : > { %v542_v44 = vpop.permute.xlu0 %541 }
  0xe2   : > { %v537_v39 = vpop.permute.xlu1 %536 }
  0xe3   : > { %611 = vmatmul.mubr.bf16.gmra.mrb[4].mxu0 %v1786_v21 }
  0xe4   : > { %1203 = vmatprep.mubr.bf16.mxu0 %v1815_v9  ;;  %v1548_v5 = vpop.permute.xlu0 %1547 }
  0xe6   : > { %v1543_v3 = vpop.permute.xlu1 %1542 }
  0xe7   : > { %v1545_v16 = vunpack.i.h.bf16 %v1543_v3  ;;  %v1544_v18 = vunpack.i.l.bf16 %v1543_v3 }
  0xe8   : > { %v2136_v7 = vpop.permute.xlu0 %1557 }
  0xea   : > { %v2134_v6 = vpop.permute.xlu1 %1552 }
  0xec   : > { %v2140_v10 = vpop.permute.xlu0 %1567 }
  0xee   : > { %v2138_v8 = vpop.permute.xlu1 %1562 }
  0xef   : > { %v1564_v23 = vunpack.i.l.bf16 %v2138_v8 }
  0xf0   : > { %v2144_v12 = vpop.permute.xlu0 %1577 }
  0xf2   : > { %v2142_v11 = vpop.permute.xlu1 %1572 }
 0x1ae   : > { %v602_v24 = vpop.f32.mrb[0].mxu0 }
 0x1af   : > { %v603_v25 = vadd.f32 %v602_v24, %v527_v22  ;;  %v604_v27 = vpop.f32.mrb[1].mxu0 }
 0x1b0   : > { %v605_v29 = vadd.f32 %v604_v27, %v527_v22  ;;  %v606_v30 = vpop.f32.mrb[2].mxu0 }
 0x1b1   : > { %v2058_v31 = vmax.f32 %v603_v25, 0.0  ;;  %v607_v9 = vadd.f32 %v606_v30, %v532_v28  ;;  %v608_v32 = vpop.f32.mrb[3].mxu0 }
 0x1b2   : > { %v2060_v33 = vmax.f32 %v605_v29, 0.0  ;;  %v609_v34 = vadd.f32 %v608_v32, %v532_v28 }
 0x1b3   : > { %v2062_v35 = vmax.f32 %v607_v9, 0.0 }
 0x1b4   : > { %v2064_v36 = vmax.f32 %v609_v34, 0.0  ;;  %v1581_v37 = vpack.i.bf16 %v2060_v33, %v2058_v31  ;;  %v1646_v61 = vpack.i.bf16 %v1799_v4, %v2060_v33 }
 0x1b5   : > { %v2070_v38 = vpack.i.bf16 %v2062_v35, %v2058_v31  ;;  %v1091_v54 = vpack.c.bf16 %v2062_v35, %v2058_v31 }
 0x1b6   : > { %v612_v40 = vpop.f32.mrb[4].mxu0  ;;  %1582 = vrot.lane.b32.xlu1 %v1581_v37, %s1816_s28  ;;  %v1601_v41 = vpack.i.bf16 %v2064_v36, %v2062_v35  ;;  %v1092_v53 = vpack.c.bf16 %v2064_v36, %v2060_v33  ;;  %v1651_v1 = vpack.i.bf16 %v1799_v4, %v2064_v36 }
 0x1b7   : > { %v613_v42 = vadd.f32 %v612_v40, %v537_v39  ;;  %v614_v43 = vpop.f32.mrb[5].mxu0 }
 0x1b8   : > { %v615_v45 = vadd.f32 %v614_v43, %v537_v39  ;;  %v616_v46 = vpop.f32.mrb[6].mxu0  ;;  %1602 = vrot.lane.b32.xlu0 %v1601_v41, %s1816_s28 }
 0x1b9   : > { %v2076_v47 = vmax.f32 %v613_v42, 0.0  ;;  %v617_v48 = vadd.f32 %v616_v46, %v542_v44  ;;  %v618_v49 = vpop.f32.mrb[7].mxu0  ;;  %v1549_v46 = vunpack.i.l.bf16 %v1548_v5 }
 0x1ba   : > { %v2078_v50 = vmax.f32 %v615_v45, 0.0  ;;  %v619_v51 = vadd.f32 %v618_v49, %v542_v44  ;;  %1587 = vrot.lane.b32.xlu1 %v1581_v37, %s1817_s29  ;;  %v1550_v45 = vunpack.i.h.bf16 %v1548_v5 }
 0x1bb   : > { %v2081_v52 = vmax.f32 %v617_v48, 0.0 }
 0x1bc   : > { %v2087_v55 = vmax.f32 %v619_v51, 0.0  ;;  %1607 = vrot.lane.b32.xlu0 %v1601_v41, %s1817_s29  ;;  %v1621_v56 = vpack.i.bf16 %v2078_v50, %v2076_v47  ;;  %v1666_v0 = vpack.i.bf16 %v1799_v4, %v2078_v50 }
 0x1bd   : > { %v1671_v57 = vpack.i.bf16 %v2081_v52, %v2076_v47  ;;  %v1093_v60 = vpack.c.bf16 %v2081_v52, %v2076_v47 }
 0x1be   : > { %1592 = vrot.lane.b32.xlu1 %v1581_v37, %s1818_s30  ;;  %v1641_v58 = vpack.i.bf16 %v2087_v55, %v2081_v52  ;;  %v1094_v59 = vpack.c.bf16 %v2087_v55, %v2078_v50  ;;  %v1731_v62 = vpack.i.bf16 %v1799_v4, %v2087_v55  ;;  %v1111_v4 = vld [vmem:[%s2383_s4] sm:$0xff] }
 0x1c0   : > { %1612 = vrot.lane.b32.xlu0 %v1601_v41, %s1818_s30 }
 0x1c2   : > { %1597 = vrot.lane.b32.xlu1 %v1581_v37, %s1820_s12 }
 0x1c4   : > { %1617 = vrot.lane.b32.xlu0 %v1601_v41, %s1820_s12 }
 0x1c6   : > { %1642 = vrot.lane.b32.xlu1 %v1641_v58, %s1816_s28 }
 0x1c8   : > { %1622 = vrot.lane.b32.xlu0 %v1621_v56, %s1816_s28  ;;  %s224_s28 = scalar_lea.vmem %s2384_s5, %s1418_s20 }
 0x1ca   : > { %1647 = vrot.lane.b32.xlu1 %v1646_v61, %s1821_s13 }
 0x1cc   : > { %1627 = vrot.lane.b32.xlu0 %v1621_v56, %s1817_s29 }
 0x1ce   : > { %1657 = vrot.lane.b32.xlu1 %v1641_v58, %s1817_s29 }
 0x1d0   : > { %1632 = vrot.lane.b32.xlu0 %v1621_v56, %s1818_s30 }
 0x1d2   : > { %1662 = vrot.lane.b32.xlu1 %v2070_v38, %s1821_s13 }
 0x1d4   : > { %1637 = vrot.lane.b32.xlu0 %v1621_v56, %s1820_s12 }
 0x1d6   : > { %1677 = vrot.lane.b32.xlu1 %v1641_v58, %s1818_s30 }
 0x1d8   : > { %1652 = vrot.lane.b32.xlu0 %v1651_v1, %s1821_s13 }
 0x1da   : > { %1682 = vrot.lane.b32.xlu1 %v1646_v61, %s1822_s14 }
 0x1dc   : > { %1667 = vrot.lane.b32.xlu0 %v1666_v0, %s1821_s13 }
 0x1de   : > { %1692 = vrot.lane.b32.xlu1 %v1641_v58, %s1820_s12 }
 0x1e0   : > { %1672 = vrot.lane.b32.xlu0 %v1671_v57, %s1821_s13 }
 0x1e2   : > { %1697 = vrot.lane.b32.xlu1 %v2070_v38, %s1822_s14 }
 0x1e4   : > { %1687 = vrot.lane.b32.xlu0 %v1651_v1, %s1822_s14 }
 0x1e6   : > { %1712 = vrot.lane.b32.xlu1 %v1646_v61, %s1823_s15 }
 0x1e8   : > { %1702 = vrot.lane.b32.xlu0 %v1666_v0, %s1822_s14 }
 0x1ea   : > { %1722 = vrot.lane.b32.xlu1 %v2070_v38, %s1823_s15 }
 0x1ec   : > { %1707 = vrot.lane.b32.xlu0 %v1671_v57, %s1822_s14 }
 0x1ee   : > { %1732 = vrot.lane.b32.xlu1 %v1731_v62, %s1821_s13 }
 0x1f0   : > { %1717 = vrot.lane.b32.xlu0 %v1651_v1, %s1823_s15 }
 0x1f2   : > { %1737 = vrot.lane.b32.xlu1 %v1651_v1, %s1824_s16 }
 0x1f4   : > { %1727 = vrot.lane.b32.xlu0 %v1646_v61, %s1824_s16 }
 0x1f6   : > { %1747 = vrot.lane.b32.xlu1 %v1731_v62, %s1822_s14 }
 0x1f8   : > { %1742 = vrot.lane.b32.xlu0 %v2070_v38, %s1824_s16 }
 0x1fa   : > { %1752 = vrot.lane.b32.xlu1 %v1666_v0, %s1823_s15 }
 0x1fc   : > { %1762 = vrot.lane.b32.xlu0 %v1666_v0, %s1824_s16 }
 0x1fe   : > { %1757 = vrot.lane.b32.xlu1 %v1671_v57, %s1823_s15 }
 0x200   : > { %1767 = vrot.lane.b32.xlu0 %v1731_v62, %s1823_s15 }
 0x202   : > { %1772 = vrot.lane.b32.xlu1 %v1731_v62, %s1824_s16 }
 0x204   : > { %1777 = vrot.lane.b32.xlu0 %v1671_v57, %s1824_s16 }
 0x206   : > { %1114 = vperm.xlu1 %1540, %v1111_v4   ;;  %v1555_v4 = vunpack.i.h.bf16 %v2134_v6 }
 0x228   : > { %v1583_v13 = vpop.permute.xlu1 %1582 }
 0x229   : > { %v1585_v14 = vunpack.i.h.bf16 %v1583_v13  ;;  %v1584_v15 = vunpack.i.l.bf16 %v1583_v13 }
 0x22a   : > { %v1603_v17 = vpop.permute.xlu0 %1602 }
 0x22b   : > { %v1605_v19 = vunpack.i.h.bf16 %v1603_v17  ;;  %v1604_v20 = vunpack.i.l.bf16 %v1603_v17  ;;  %v693_v22 = vsel %vm691_vm10, %v1584_v15, %v1585_v14  ;;  %v692_v27 = vsel %vm691_vm10, %v1544_v18, %v1584_v15 }
 0x22c   : > { %v1588_v21 = vpop.permute.xlu1 %1587  ;;  %v1554_v17 = vunpack.i.l.bf16 %v2134_v6  ;;  %v1559_v6 = vunpack.i.l.bf16 %v2136_v7 }
 0x22d   : > { %v695_v24 = vsel %vm691_vm10, %v1604_v20, %v1605_v19  ;;  %v694_v28 = vsel %vm691_vm10, %v1545_v16, %v1604_v20  ;;  %v1590_v49 = vunpack.i.h.bf16 %v1588_v21  ;;  %v1589_v51 = vunpack.i.l.bf16 %v1588_v21 }
 0x22e   : > { %v1608_v29 = vpop.permute.xlu0 %1607  ;;  %v1344_v30 = vpack.c.bf16 %v695_v24, %v693_v22  ;;  %v1347_v32 = vpack.c.bf16 %v694_v28, %v692_v27  ;;  %v1560_v28 = vunpack.i.h.bf16 %v2136_v7 }
 0x22f   : > { %v1610_v40 = vunpack.i.h.bf16 %v1608_v29  ;;  %v1609_v41 = vunpack.i.l.bf16 %v1608_v29  ;;  %v1017_v16 = vsel %vm1015_vm13, %v1589_v51, %v1590_v49 }
 0x230   : > { %v2160_v34 = vpop.permute.xlu1 %1592  ;;  %1345 = vmatprep.subr.msk.bf16.mxu1 %vm2150_vm7, %v1344_v30 }
 0x231   : > { %1348 = vmatpush1.bf16.msk.msra.mxu1 %vm2156_vm15, %v1347_v32  ;;  %v1019_v61 = vsel %vm1015_vm13, %v1609_v41, %v1610_v40  ;;  %v1018_v20 = vsel %vm1015_vm13, %v1555_v4, %v1609_v41  ;;  %v1595_v29 = vunpack.i.h.bf16 %v2160_v34  ;;  %v1016_v32 = vsel %vm1015_vm13, %v1554_v17, %v1589_v51 }
 0x232   : > { %v2166_v37 = vpop.permute.xlu0 %1612  ;;  %v1080_v19 = vpack.c.bf16 %v1019_v61, %v1017_v16  ;;  %v1594_v40 = vunpack.i.l.bf16 %v2160_v34  ;;  %v1079_v41 = vpack.c.bf16 %v1018_v20, %v1016_v32  ;;  %v1569_v20 = vunpack.i.l.bf16 %v2140_v10 }
 0x233   : > { %v1615_v21 = vunpack.i.h.bf16 %v2166_v37  ;;  %v1614_v22 = vunpack.i.l.bf16 %v2166_v37  ;;  %v1574_v32 = vunpack.i.l.bf16 %v2142_v11 }
 0x234   : > { %v2168_v38 = vpop.permute.xlu1 %1597  ;;  %v748_v49 = vsel %vm746_vm1, %v1594_v40, %v1595_v29 }
 0x235   : > { %v750_v7 = vsel %vm746_vm1, %v1614_v22, %v1615_v21  ;;  %v1599_v17 = vunpack.i.l.bf16 %v2168_v38 }
 0x236   : > { %v2170_v39 = vpop.permute.xlu0 %1617 }
 0x237   : > { %v1619_v4 = vunpack.i.l.bf16 %v2170_v39 }
 0x238   : > { %v1643_v42 = vpop.permute.xlu1 %1642 }
 0x239   : > { %v1645_v43 = vunpack.i.h.bf16 %v1643_v42  ;;  %v1644_v44 = vunpack.i.l.bf16 %v1643_v42 }
 0x23a   : > { %v1623_v48 = vpop.permute.xlu0 %1622 }
 0x23b   : > { %v1625_v56 = vunpack.i.h.bf16 %v1623_v48  ;;  %v1624_v57 = vunpack.i.l.bf16 %v1623_v48  ;;  %v698_v1 = vsel %vm691_vm10, %v1550_v45, %v1644_v44  ;;  %v699_v0 = vsel %vm691_vm10, %v1644_v44, %v1645_v43 }
 0x23c   : > { %v2172_v58 = vpop.permute.xlu1 %1647 }
 0x23d   : > { %v696_v62 = vsel %vm691_vm10, %v1549_v46, %v1624_v57  ;;  %v697_v2 = vsel %vm691_vm10, %v1624_v57, %v1625_v56  ;;  %v1565_v46 = vunpack.i.h.bf16 %v2138_v8 }
 0x23e   : > { %v1350_v3 = vpack.c.bf16 %v699_v0, %v697_v2  ;;  %v1353_v5 = vpack.c.bf16 %v698_v1, %v696_v62  ;;  %v1628_v13 = vpop.permute.xlu0 %1627  ;;  %v1356_v0 = vpack.c.bf16 %v750_v7, %v748_v49  ;;  %v1620_v2 = vunpack.i.h.bf16 %v2170_v39 }
 0x23f   : > { %v1630_v14 = vunpack.i.h.bf16 %v1628_v13  ;;  %v1629_v15 = vunpack.i.l.bf16 %v1628_v13  ;;  %v749_v1 = vsel %vm746_vm1, %v1565_v46, %v1614_v22  ;;  %v1570_v13 = vunpack.i.h.bf16 %v2140_v10 }
 0x240   : > { %v1658_v18 = vpop.permute.xlu1 %1657  ;;  %1351 = vmatprep.subr.msk.bf16.mxu1 %vm2150_vm7, %v1350_v3  ;;  %v799_v26 = vsel %vm795_vm9, %v1619_v4, %v1620_v2  ;;  %v796_v7 = vsel %vm795_vm9, %v1574_v32, %v1599_v17  ;;  %v1579_v49 = vunpack.i.l.bf16 %v2144_v12 }
 0x241   : > { %v1660_v24 = vunpack.i.h.bf16 %v1658_v18  ;;  %v1659_v27 = vunpack.i.l.bf16 %v1658_v18  ;;  %1354 = vmatpush1.bf16.msk.msra.mxu1 %vm2156_vm15, %v1353_v5  ;;  %v1021_v37 = vsel %vm1015_vm13, %v1629_v15, %v1630_v14  ;;  %v1020_v34 = vsel %vm1015_vm13, %v1559_v6, %v1629_v15 }
 0x242   : > { %v1633_v30 = vpop.permute.xlu0 %1632  ;;  %1134 = vmatprep.subr.bf16.mxu1 %v1080_v19  ;;  %v747_v14 = vsel %vm746_vm1, %v1564_v23, %v1594_v40  ;;  %v1600_v15 = vunpack.i.h.bf16 %v2168_v38 }
 0x243   : > { %v1023_v42 = vsel %vm1015_vm13, %v1659_v27, %v1660_v24  ;;  %v1022_v45 = vsel %vm1015_vm13, %v1560_v28, %v1659_v27  ;;  %v1635_v51 = vunpack.i.h.bf16 %v1633_v30  ;;  %v1634_v56 = vunpack.i.l.bf16 %v1633_v30 }
 0x244   : > { %v2196_v43 = vpop.permute.xlu1 %1662  ;;  %v1082_v44 = vpack.c.bf16 %v1023_v42, %v1021_v37  ;;  %v1081_v57 = vpack.c.bf16 %v1022_v45, %v1020_v34  ;;  %v1359_v39 = vpack.c.bf16 %v749_v1, %v747_v14  ;;  %v1575_v27 = vunpack.i.h.bf16 %v2142_v11 }
 0x245   : > { %1135 = vmatpush1.bf16.msra.mxu1 %v1079_v41  ;;  %v752_v18 = vsel %vm746_vm1, %v1634_v56, %v1635_v51  ;;  %v751_v38 = vsel %vm746_vm1, %v1569_v20, %v1634_v56  ;;  %v797_v10 = vsel %vm795_vm9, %v1599_v17, %v1600_v15  ;;  %v1580_v45 = vunpack.i.h.bf16 %v2144_v12 }
 0x246   : > { %v2202_v48 = vpop.permute.xlu0 %1637  ;;  %1136 = vmatprep.subr.bf16.mxu1 %v1082_v44  ;;  %v798_v40 = vsel %vm795_vm9, %v1575_v27, %v1619_v4  ;;  %v1368_v41 = vpack.c.bf16 %v799_v26, %v797_v10  ;;  %v1665_v14 = vunpack.i.h.bf16 %v2196_v43 }
 0x247   : > { %v1640_v6 = vunpack.i.h.bf16 %v2202_v48  ;;  %v1639_v29 = vunpack.i.l.bf16 %v2202_v48  ;;  %v1371_v48 = vpack.c.bf16 %v798_v40, %v796_v7 }
 0x248   : > { %v1678_v62 = vpop.permute.xlu1 %1677 }
 0x249   : > { %v1680_v3 = vunpack.i.h.bf16 %v1678_v62  ;;  %v1679_v5 = vunpack.i.l.bf16 %v1678_v62  ;;  %1137 = vmatpush1.bf16.msra.mxu1 %v1081_v57  ;;  %v801_v11 = vsel %vm795_vm9, %v1639_v29, %v1640_v6  ;;  %v800_v23 = vsel %vm795_vm9, %v1579_v49, %v1639_v29 }
 0x24a   : > { %v2218_v16 = vpop.permute.xlu0 %1652  ;;  %1357 = vmatprep.subr.msk.bf16.mxu1 %vm2207_vm4, %v1356_v0 }
 0x24b   : > { %v754_v19 = vsel %vm746_vm1, %v1679_v5, %v1680_v3  ;;  %v753_v21 = vsel %vm746_vm1, %v1570_v13, %v1679_v5  ;;  %v1655_v2 = vunpack.i.h.bf16 %v2218_v16  ;;  %v1654_v12 = vunpack.i.l.bf16 %v2218_v16 }
 0x24c   : > { %v1362_v22 = vpack.c.bf16 %v754_v19, %v752_v18  ;;  %v2234_v24 = vpop.permute.xlu1 %1682  ;;  %v1365_v30 = vpack.c.bf16 %v753_v21, %v751_v38  ;;  %v1650_v3 = vunpack.i.h.bf16 %v2172_v58  ;;  %v1649_v5 = vunpack.i.l.bf16 %v2172_v58 }
 0x24d   : > { %1360 = vmatpush1.bf16.msk.msra.mxu1 %vm2225_vm5, %v1359_v39  ;;  %v872_v15 = vsel %vm868_vm12, %v1654_v12, %v1655_v2  ;;  %v1664_v16 = vunpack.i.l.bf16 %v2196_v43  ;;  %v1685_v31 = vunpack.i.h.bf16 %v2234_v24  ;;  %v1684_v35 = vunpack.i.l.bf16 %v2234_v24 }
 0x24e   : > { %v2241_v28 = vpop.permute.xlu0 %1667  ;;  %1363 = vmatprep.subr.msk.bf16.mxu1 %vm2207_vm4, %v1362_v22  ;;  %v870_v36 = vsel %vm868_vm12, %v1649_v5, %v1650_v3 }
 0x24f   : > { %v1670_v58 = vunpack.i.h.bf16 %v2241_v28  ;;  %v1669_v39 = vunpack.i.l.bf16 %v2241_v28  ;;  %v1380_v17 = vpack.c.bf16 %v872_v15, %v870_v36  ;;  %v869_v55 = vsel %vm868_vm12, %v1664_v16, %v1649_v5 }
 0x250   : > { %v1693_v37 = vpop.permute.xlu1 %1692  ;;  %v919_v38 = vsel %vm917_vm8, %v1684_v35, %v1685_v31 }
 0x251   : > { %v1695_v42 = vunpack.i.h.bf16 %v1693_v37  ;;  %v1694_v44 = vunpack.i.l.bf16 %v1693_v37  ;;  %1366 = vmatpush1.bf16.msk.msra.mxu1 %vm2225_vm5, %v1365_v30  ;;  %v874_v26 = vsel %vm868_vm12, %v1669_v39, %v1670_v58 }
 0x252   : > { %v1673_v46 = vpop.permute.xlu0 %1672  ;;  %1369 = vmatprep.subr.msk.bf16.mxu1 %vm2150_vm7, %v1368_v41 }
 0x253   : > { %v803_v34 = vsel %vm795_vm9, %v1694_v44, %v1695_v42  ;;  %v802_v51 = vsel %vm795_vm9, %v1580_v45, %v1694_v44 }
 0x254   : > { %v1374_v56 = vpack.c.bf16 %v803_v34, %v801_v11  ;;  %v1698_v57 = vpop.permute.xlu1 %1697  ;;  %v1377_v0 = vpack.c.bf16 %v802_v51, %v800_v23 }
 0x255   : > { %1372 = vmatpush1.bf16.msk.msra.mxu1 %vm2156_vm15, %v1371_v48  ;;  %v1699_v21 = vunpack.i.l.bf16 %v1698_v57  ;;  %v1700_v28 = vunpack.i.h.bf16 %v1698_v57 }
 0x256   : > { %v1688_v1 = vpop.permute.xlu0 %1687  ;;  %1375 = vmatprep.subr.msk.bf16.mxu1 %vm2150_vm7, %v1374_v56 }
 0x257   : > { %v1690_v18 = vunpack.i.h.bf16 %v1688_v1  ;;  %v1689_v19 = vunpack.i.l.bf16 %v1688_v1  ;;  %v918_v32 = vsel %vm917_vm8, %v1699_v21, %v1684_v35 }
 0x258   : > { %v2265_v62 = vpop.permute.xlu1 %1712 }
 0x259   : > { %1378 = vmatpush1.bf16.msk.msra.mxu1 %vm2156_vm15, %v1377_v0  ;;  %v921_v6 = vsel %vm917_vm8, %v1689_v19, %v1690_v18  ;;  %v920_v40 = vsel %vm917_vm8, %v1700_v28, %v1689_v19  ;;  %v1715_v41 = vunpack.i.h.bf16 %v2265_v62  ;;  %v1714_v11 = vunpack.i.l.bf16 %v2265_v62 }
 0x25a   : > { %v2271_v4 = vpop.permute.xlu0 %1702  ;;  %1146 = vmatprep.subr.bf16.mxu1 %v1092_v53  ;;  %v871_v53 = vsel %vm868_vm12, %v1665_v14, %v1654_v12  ;;  %v1392_v48 = vpack.c.bf16 %v921_v6, %v919_v38  ;;  %v1395_v0 = vpack.c.bf16 %v920_v40, %v918_v32 }
 0x25b   : > { %v1383_v24 = vpack.c.bf16 %v871_v53, %v869_v55  ;;  %v1705_v37 = vunpack.i.h.bf16 %v2271_v4  ;;  %v1704_v44 = vunpack.i.l.bf16 %v2271_v4  ;;  %v1058_v19 = vsel %vm1056_vm6, %v1714_v11, %v1715_v41 }
 0x25c   : > { %v2278_v13 = vpop.permute.xlu1 %1722 }
 0x25d   : > { %1147 = vmatpush1.bf16.msra.mxu1 %v1091_v54  ;;  %v1674_v54 = vunpack.i.l.bf16 %v1673_v46  ;;  %v923_v3 = vsel %vm917_vm8, %v1704_v44, %v1705_v37  ;;  %v1725_v16 = vunpack.i.h.bf16 %v2278_v13 }
 0x25e   : > { %v2286_v33 = vpop.permute.xlu0 %1707  ;;  %1148 = vmatprep.subr.bf16.mxu1 %v1094_v59  ;;  %v1675_v59 = vunpack.i.h.bf16 %v1673_v46 }
 0x25f   : > { %v873_v10 = vsel %vm868_vm12, %v1674_v54, %v1669_v39  ;;  %v1710_v2 = vunpack.i.h.bf16 %v2286_v33  ;;  %v1709_v12 = vunpack.i.l.bf16 %v2286_v33  ;;  %v1724_v33 = vunpack.i.l.bf16 %v2278_v13 }
 0x260   : > { %v1733_v43 = vpop.permute.xlu1 %1732 }
 0x261   : > { %v1735_v20 = vunpack.i.h.bf16 %v1733_v43  ;;  %v1734_v50 = vunpack.i.l.bf16 %v1733_v43  ;;  %1149 = vmatpush1.bf16.msra.mxu1 %v1093_v60  ;;  %v922_v35 = vsel %vm917_vm8, %v1709_v12, %v1704_v44 }
 0x262   : > { %v2301_v22 = vpop.permute.xlu0 %1717  ;;  %1381 = vmatprep.subr.msk.bf16.mxu1 %vm2207_vm4, %v1380_v17 }
 0x263   : > { %v876_v27 = vsel %vm868_vm12, %v1734_v50, %v1735_v20  ;;  %v875_v47 = vsel %vm868_vm12, %v1675_v59, %v1734_v50  ;;  %v1720_v34 = vunpack.i.h.bf16 %v2301_v22  ;;  %v1719_v49 = vunpack.i.l.bf16 %v2301_v22 }
 0x264   : > { %v1386_v52 = vpack.c.bf16 %v876_v27, %v874_v26  ;;  %v1738_v60 = vpop.permute.xlu1 %1737  ;;  %v1389_v45 = vpack.c.bf16 %v875_v47, %v873_v10  ;;  %v1057_v22 = vsel %vm1056_vm6, %v1724_v33, %v1714_v11 }
 0x265   : > { %v1740_v29 = vunpack.i.h.bf16 %v1738_v60  ;;  %v1739_v30 = vunpack.i.l.bf16 %v1738_v60  ;;  %1384 = vmatpush1.bf16.msk.msra.mxu1 %vm2225_vm5, %v1383_v24  ;;  %v1060_v31 = vsel %vm1056_vm6, %v1719_v49, %v1720_v34  ;;  %v1059_v13 = vsel %vm1056_vm6, %v1725_v16, %v1719_v49  ;;  %v1789_v49 = vld [vmem:[%s2381_s2 + $0x8] ss:$0 sps:$4 sm:$0xff]  }
 0x266   : > { %v1728_v42 = vpop.permute.xlu0 %1727  ;;  %1387 = vmatprep.subr.msk.bf16.mxu1 %vm2207_vm4, %v1386_v52  ;;  %v1104_v59 = vpack.c.bf16 %v1060_v31, %v1058_v19  ;;  %v1103_v26 = vpack.c.bf16 %v1059_v13, %v1057_v22 }
 0x267   : > { %v1730_v7 = vunpack.i.h.bf16 %v1728_v42  ;;  %v1729_v46 = vunpack.i.l.bf16 %v1728_v42  ;;  %v970_v56 = vsel %vm966_vm11, %v1739_v30, %v1740_v29 }
 0x268   : > { %v1748_v51 = vpop.permute.xlu1 %1747 }
 0x269   : > { %v968_v57 = vsel %vm966_vm11, %v1729_v46, %v1730_v7  ;;  %v1750_v23 = vunpack.i.h.bf16 %v1748_v51  ;;  %v1749_v1 = vunpack.i.l.bf16 %v1748_v51  ;;  %1390 = vmatpush1.bf16.msk.msra.mxu1 %vm2225_vm5, %v1389_v45 }
 0x26a   : > { %v1404_v62 = vpack.c.bf16 %v970_v56, %v968_v57  ;;  %v1743_v4 = vpop.permute.xlu0 %1742  ;;  %1393 = vmatprep.subr.msk.bf16.mxu1 %vm2150_vm7, %v1392_v48 }
 0x26b   : > { %v925_v5 = vsel %vm917_vm8, %v1749_v1, %v1750_v23  ;;  %v1745_v14 = vunpack.i.h.bf16 %v1743_v4  ;;  %v1744_v15 = vunpack.i.l.bf16 %v1743_v4  ;;  %v924_v36 = vsel %vm917_vm8, %v1710_v2, %v1749_v1 }
 0x26c   : > { %v1398_v53 = vpack.c.bf16 %v925_v5, %v923_v3  ;;  %v1753_v58 = vpop.permute.xlu1 %1752  ;;  %1405 = vmatprep.subr.msk.bf16.mxu0 %vm2207_vm4, %v1404_v62  ;;  %v1401_v18 = vpack.c.bf16 %v924_v36, %v922_v35 }
 0x26d   : > { %v967_v39 = vsel %vm966_vm11, %v1744_v15, %v1729_v46  ;;  %v969_v17 = vsel %vm966_vm11, %v1745_v14, %v1739_v30  ;;  %1396 = vmatpush1.bf16.msk.msra.mxu1 %vm2156_vm15, %v1395_v0  ;;  %v1755_v20 = vunpack.i.h.bf16 %v1753_v58  ;;  %v1754_v50 = vunpack.i.l.bf16 %v1753_v58 }
 0x26e   : > { %v1407_v54 = vpack.c.bf16 %v969_v17, %v967_v39  ;;  %v1763_v43 = vpop.permute.xlu0 %1762  ;;  %1399 = vmatprep.subr.msk.bf16.mxu1 %vm2150_vm7, %v1398_v53  ;;  %v1340_v46 = vcombine.low %v2127_v63, %v2127_v63 }
 0x26f   : > { %v1765_v25 = vunpack.i.h.bf16 %v1763_v43  ;;  %v1764_v27 = vunpack.i.l.bf16 %v1763_v43  ;;  %v1062_v60 = vsel %vm1056_vm6, %v1754_v50, %v1755_v20 }
 0x270   : > { %v1758_v55 = vpop.permute.xlu1 %1757  ;;  %1408 = vmatpush1.bf16.msk.msra.mxu0 %vm2225_vm5, %v1407_v54 }
 0x271   : > { %v1759_v21 = vunpack.i.l.bf16 %v1758_v55  ;;  %1402 = vmatpush1.bf16.msk.msra.mxu1 %vm2156_vm15, %v1401_v18  ;;  %v1760_v38 = vunpack.i.h.bf16 %v1758_v55  ;;  %v972_v37 = vsel %vm966_vm11, %v1764_v27, %v1765_v25 }
 0x272   : > { %v1768_v24 = vpop.permute.xlu0 %1767  ;;  %1158 = vmatprep.subr.bf16.mxu1 %v1104_v59 }
 0x273   : > { %v1770_v28 = vunpack.i.h.bf16 %v1768_v24  ;;  %v1769_v47 = vunpack.i.l.bf16 %v1768_v24  ;;  %v1061_v10 = vsel %vm1056_vm6, %v1759_v21, %v1754_v50 }
 0x274   : > { %v1773_v52 = vpop.permute.xlu1 %1772 }
 0x275   : > { %v1775_v6 = vunpack.i.h.bf16 %v1773_v52  ;;  %v1774_v29 = vunpack.i.l.bf16 %v1773_v52  ;;  %1159 = vmatpush1.bf16.msra.mxu1 %v1103_v26  ;;  %v1064_v9 = vsel %vm1056_vm6, %v1769_v47, %v1770_v28  ;;  %v1063_v30 = vsel %vm1056_vm6, %v1760_v38, %v1769_v47 }
 0x276   : > { %v1778_v32 = vpop.permute.xlu0 %1777  ;;  %v1106_v40 = vpack.c.bf16 %v1064_v9, %v1062_v60  ;;  %v1105_v41 = vpack.c.bf16 %v1063_v30, %v1061_v10 }
 0x277   : > { %v974_v42 = vsel %vm966_vm11, %v1774_v29, %v1775_v6  ;;  %v1780_v44 = vunpack.i.h.bf16 %v1778_v32  ;;  %v1779_v45 = vunpack.i.l.bf16 %v1778_v32 }
 0x278   : > { %v1410_v7 = vpack.c.bf16 %v974_v42, %v972_v37  ;;  %1160 = vmatprep.subr.bf16.mxu1 %v1106_v40 }
 0x279   : > { %v971_v48 = vsel %vm966_vm11, %v1779_v45, %v1764_v27  ;;  %v973_v11 = vsel %vm966_vm11, %v1780_v44, %v1774_v29  ;;  %1161 = vmatpush1.bf16.msra.mxu1 %v1105_v41 }
 0x27a   : > { %v1413_v34 = vpack.c.bf16 %v973_v11, %v971_v48  ;;  %1411 = vmatprep.subr.msk.bf16.mxu0 %vm2207_vm4, %v1410_v7 }
 0x27c   : > { %1163 = vmatmul.mubr.bf16.vlgmr.msra.gmra.mrb[0].mxu1 %v1340_v46  ;;  %1414 = vmatpush1.bf16.msk.msra.mxu0 %vm2225_vm5, %v1413_v34 }
 0x27f   : > { %1415 = vmatmul.mubr.msk.bf16.vlgmr.msra.gmra.mrb[8].mxu0 %vm491_vm0, %v1789_v49 }
 0x285   : > { %v1115_v63 = vpop.permute.xlu1 %1114 }
 0x34f   : > { %v1164_v51 = vpop.f32.mrb[0].mxu1 }
 0x350   : > { %v1165_v56 = vadd.f32 %v1164_v51, %v1115_v63  ;;  %v1166_v57 = vpop.f32.mrb[1].mxu1 }
 0x351   : > { %v1167_v23 = vadd.f32 %v1166_v57, %v1115_v63  ;;  %v1168_v1 = vpop.f32.mrb[2].mxu1 }
 0x352   : > { %v1205_v0 = vpop.f32.mrb[8].mxu0  ;;  %v1169_v61 = vpop.f32.mrb[3].mxu1 }
 0x353   : > { %v1206_v2 = vadd.f32 %v1205_v0, %v1165_v56  ;;  %v1207_v12 = vpop.f32.mrb[9].mxu0 }
 0x354   : > { %v1208_v62 = vadd.f32 %v1207_v12, %v1167_v23  ;;  %v1209_v8 = vpop.f32.mrb[10].mxu0 }
 0x355   : > { %v1212_v4 = vmax.f32 %v1206_v2, 0.0  ;;  %v1210_v3 = vpop.f32.mrb[11].mxu0 }
 0x356   : > { %v1213_v5 = vmax.f32 %v1208_v62, 0.0 }
 0x357   : > { %1214 = vst [vmem:[%s224_s28] sm:$0xff] %v1212_v4 }
 0x358   : > { %1215 = vst [vmem:[%s224_s28 + $0x8] sm:$0xff] %v1213_v5 }
 0x359 PF: > { %s15_s18 = sadd.s32 1, %s1796_s18  }
 0x35a   : > { %p12_p4 = scmp.ge.s32.totalorder %s15_s18, 4  }
 0x35c   :  { %14 = sbr.rel (!%p12_p4) target bundleno = 1 (0x1), region = 70 }

</bundles_post_ra>
